<compile_context>
chip_gen: v7x
topology: tpu7x:2x2x1
jax: 0.10.0
libtpu: 0.0.40
codegen_flags: <defaults>
</compile_context>

<pallas_src>
import math
from functools import partial

import jax
import jax.numpy as jnp
from jax.experimental import pallas as pl
from jax.experimental.pallas import tpu as pltpu

_LN_EPS = 1e-5


def _layernorm(x, g, b):
    mu = jnp.mean(x, axis=-1, keepdims=True)
    xc = x - mu
    var = jnp.mean(xc * xc, axis=-1, keepdims=True)      # biased variance (torch LN)
    return xc * jax.lax.rsqrt(var + _LN_EPS) * g + b


# ----------------------------------------------------------------------------
# Fused kernel (one batch image per grid step):
#   LN1 -> fused qkv (scale + Wp pre-folded) -> attention -> +res
#   -> LN2 -> fc1 -> dwconv3x3 -> GELU -> fc2 -> +res
# ----------------------------------------------------------------------------
def block_kernel(x_ref, g1_ref, b1_ref, wqkv_ref, bp_ref, g2_ref, b2_ref,
                 w1_ref, bf1_ref, wdw_ref, bdw_ref, w2_ref, bf2_ref,
                 o_ref, *, H, W, C, num_heads):
    N = H * W
    hd = C // num_heads

    x = x_ref[...]                                                  # (N, C) f32

    # ---------------- attention branch (pre-LN) ----------------
    xn = _layernorm(x, g1_ref[...], b1_ref[...])
    # fused q|k|v-proj projection; softmax scale folded into the q columns and
    # the output projection Wp folded per-head into the v columns.
    qkv = jnp.dot(xn.astype(jnp.bfloat16), wqkv_ref[...],
                  preferred_element_type=jnp.float32)               # (N, 2C + num_heads*C)

    acc = None
    for h in range(num_heads):                                      # static loop
        c0 = h * hd
        q = qkv[:, c0:c0 + hd].astype(jnp.bfloat16)                 # (N, hd), pre-scaled
        k = qkv[:, C + c0:C + c0 + hd].astype(jnp.bfloat16)         # (N, hd)
        # scores = (q*scale) @ k^T without materializing a transpose
        s = jax.lax.dot_general(q, k, (((1,), (1,)), ((), ())),
                                preferred_element_type=jnp.float32)  # (N, N) f32
        m = jnp.max(s, axis=-1, keepdims=True)
        p = jnp.exp(s - m)
        l = jnp.sum(p, axis=-1, keepdims=True)
        p = p * pl.reciprocal(l, approx=True)                       # EUP, ~free
        # vp = v_h already projected through Wp_h (folded at init): (N, C)
        vp = qkv[:, 2 * C + h * C:2 * C + (h + 1) * C].astype(jnp.bfloat16)
        ph = jnp.dot(p.astype(jnp.bfloat16), vp,
                     preferred_element_type=jnp.float32)            # (N, C)
        acc = ph if acc is None else acc + ph
    x = x + acc + bp_ref[...]                                       # residual 1

    # ---------------- MLP branch (pre-LN) ----------------
    xn2 = _layernorm(x, g2_ref[...], b2_ref[...])
    hmid = jnp.dot(xn2.astype(jnp.bfloat16), w1_ref[...],
                   preferred_element_type=jnp.float32) + bf1_ref[...]  # (N, hidden)
    hidden = hmid.shape[-1]

    # depthwise 3x3 (stride 1, pad 1) on the flattened (N, hidden) slab.
    # Tap (i, j) at output row n reads row n + (i-1)*W + (j-1) of the slab;
    # rows outside [0, N) come from the zero padding, x-wraps are masked.
    PAD = 16                                            # >= W+1, sublane aligned
    zpad = jnp.zeros((PAD, hidden), jnp.float32)
    hpad = jnp.concatenate([zpad, hmid, zpad], axis=0)  # (N + 2*PAD, hidden)

    rows = jax.lax.broadcasted_iota(jnp.int32, (N, hidden), 0)
    if W & (W - 1) == 0:
        xq = jnp.bitwise_and(rows, W - 1)               # column index of each row
    else:
        xq = rows % W
    ok_left = xq >= 1                                   # dx = -1 stays in-row
    ok_right = xq <= W - 2                              # dx = +1 stays in-row

    wdw = wdw_ref[...]                                  # (9, hidden) f32
    conv = None
    for i in range(3):
        for j in range(3):
            off = (i - 1) * W + (j - 1)
            tap = hpad[PAD + off:PAD + off + N, :]      # static sublane shift
            if j == 0:
                tap = jnp.where(ok_left, tap, 0.0)
            elif j == 2:
                tap = jnp.where(ok_right, tap, 0.0)
            term = tap * wdw[i * 3 + j:i * 3 + j + 1, :]
            conv = term if conv is None else conv + term
    y = conv + bdw_ref[...]
    y = 0.5 * y * (1.0 + jax.lax.erf(y * (1.0 / math.sqrt(2.0))))   # exact GELU

    out = jnp.dot(y.astype(jnp.bfloat16), w2_ref[...],
                  preferred_element_type=jnp.float32) + bf2_ref[...]  # (N, C)
    o_ref[...] = x + out                                             # residual 2


# ----------------------------------------------------------------------------
# Wrapper: one pallas_call, grid over batch, weights resident in VMEM
# ----------------------------------------------------------------------------
def block_forward(x, params, H, W, *, num_heads):
    B, N, C = x.shape
    assert N == H * W
    x2 = x.reshape(B * N, C)

    kernel = partial(block_kernel, H=H, W=W, C=C, num_heads=num_heads)

    args = (x2, params["g1"], params["b1"], params["Wqkv"], params["bp"],
            params["g2"], params["b2"], params["W1"], params["bf1"],
            params["Wdw9"], params["bdw"], params["W2"], params["bf2"])

    in_specs = [pl.BlockSpec((N, C), lambda b: (b, 0))]
    for a in args[1:]:
        in_specs.append(pl.BlockSpec(a.shape, lambda b: (0, 0)))

    out = pl.pallas_call(
        kernel,
        out_shape=jax.ShapeDtypeStruct((B * N, C), jnp.float32),
        grid=(B,),
        in_specs=in_specs,
        out_specs=pl.BlockSpec((N, C), lambda b: (b, 0)),
        compiler_params=pltpu.CompilerParams(
            dimension_semantics=("parallel",)),
    )(*args)
    return out.reshape(B, N, C)


# ----------------------------------------------------------------------------
# Deterministic parameter init (mirrors the shapes of the torch module).
# Kernel weights are stored in bf16; the pure-JAX reference uses the same
# bf16-rounded values upcast to f32, so the check isolates activation error.
# ----------------------------------------------------------------------------
def init_params(key, dim, num_heads, mlp_ratio):
    hidden = int(dim * mlp_ratio)
    hd = dim // num_heads
    scale = hd ** (-0.5)
    ks = jax.random.split(key, 8)

    def lin_t(k, out_f, in_f):
        # torch nn.Linear weight is (out, in); store transposed (in, out) so x @ W.
        w = 0.02 * jax.random.normal(k, (out_f, in_f), jnp.float32)
        return w.T

    def bfr(w):  # bf16-round once; return (bf16 kernel copy, f32 reference copy)
        wb = w.astype(jnp.bfloat16)
        return wb, wb.astype(jnp.float32)

    _, wq_f = bfr(lin_t(ks[0], dim, dim))
    _, wkv_f = bfr(lin_t(ks[1], 2 * dim, dim))
    _, wp_f = bfr(lin_t(ks[2], dim, dim))
    w1_b, w1_f = bfr(lin_t(ks[3], hidden, dim))
    w2_b, w2_f = bfr(lin_t(ks[4], dim, hidden))

    # depthwise conv weight: torch (hidden, 1, 3, 3), init std = sqrt(2 / (3*3*1))
    wdw = math.sqrt(2.0 / 9.0) * jax.random.normal(ks[5], (hidden, 1, 3, 3),
                                                   jnp.float32)

    # fused q | k | v-proj weight: softmax scale folded into the q columns,
    # per-head output projection Wp folded into the v columns (Wvp_h = Wv_h @ Wp_h).
    wk_f = wkv_f[:, :dim]
    blocks = [wq_f * scale, wk_f]
    for h in range(num_heads):
        wv_h = wkv_f[:, dim + h * hd:dim + (h + 1) * hd]      # (dim, hd)
        wp_h = wp_f[h * hd:(h + 1) * hd, :]                   # (hd, dim)
        blocks.append(wv_h @ wp_h)                            # (dim, dim)
    wqkv_b = jnp.concatenate(blocks, axis=1).astype(jnp.bfloat16)  # (dim, (2+nh)*dim)

    params = {
        "g1": jnp.ones((1, dim), jnp.float32),
        "b1": jnp.zeros((1, dim), jnp.float32),
        "g2": jnp.ones((1, dim), jnp.float32),
        "b2": jnp.zeros((1, dim), jnp.float32),
        "Wqkv": wqkv_b,                                       # bf16, qkv_bias=False
        "bp": jnp.zeros((1, dim), jnp.float32),
        "W1": w1_b,                                           # bf16
        "bf1": jnp.zeros((1, hidden), jnp.float32),
        "Wdw9": jnp.transpose(wdw[:, 0, :, :].reshape(hidden, 9)),   # (9, hidden) f32
        "bdw": jnp.zeros((1, hidden), jnp.float32),
        "W2": w2_b,                                           # bf16
        "bf2": jnp.zeros((1, dim), jnp.float32),
        # f32 copies (same bf16-rounded values) for the pure-JAX reference
        "_Wq_t": wq_f, "_Wkv_t": wkv_f, "_Wp_t": wp_f,
        "_W1_t": w1_f, "_W2_t": w2_f,
        "_Wdw_hwio": jnp.transpose(wdw, (2, 3, 1, 0)),        # (3,3,1,hidden)
    }
    return params


# ----------------------------------------------------------------------------
# Pure-JAX reference (mirrors the PyTorch Block forward) for a sanity check
# ----------------------------------------------------------------------------
def block_reference(x, p, H, W, *, num_heads):
    B, N, C = x.shape
    hd = C // num_heads
    scale = hd ** (-0.5)

    def ln(v, g, b):
        mu = jnp.mean(v, axis=-1, keepdims=True)
        var = jnp.mean((v - mu) ** 2, axis=-1, keepdims=True)
        return (v - mu) * jax.lax.rsqrt(var + _LN_EPS) * g.reshape(-1) + b.reshape(-1)

    xn = ln(x, p["g1"], p["b1"])
    q = xn @ p["_Wq_t"]
    kv = xn @ p["_Wkv_t"]
    q = q.reshape(B, N, num_heads, hd).transpose(0, 2, 1, 3)
    k = kv[..., :C].reshape(B, N, num_heads, hd).transpose(0, 2, 1, 3)
    v = kv[..., C:].reshape(B, N, num_heads, hd).transpose(0, 2, 1, 3)
    attn = jnp.einsum("bhqd,bhkd->bhqk", q, k) * scale
    attn = jax.nn.softmax(attn, axis=-1)
    o = jnp.einsum("bhqk,bhkd->bhqd", attn, v)
    o = o.transpose(0, 2, 1, 3).reshape(B, N, C)
    o = o @ p["_Wp_t"] + p["bp"].reshape(-1)
    x = x + o

    xn2 = ln(x, p["g2"], p["b2"])
    h = xn2 @ p["_W1_t"] + p["bf1"].reshape(-1)
    hidden = h.shape[-1]
    conv = jax.lax.conv_general_dilated(
        h.reshape(B, H, W, hidden), p["_Wdw_hwio"], window_strides=(1, 1),
        padding="SAME", dimension_numbers=("NHWC", "HWIO", "NHWC"),
        feature_group_count=hidden)
    conv = conv + p["bdw"].reshape(-1)
    g = 0.5 * conv * (1.0 + jax.lax.erf(conv * (1.0 / math.sqrt(2.0))))
    out = g.reshape(B, N, hidden) @ p["_W2_t"] + p["bf2"].reshape(-1)
    return x + out


# ----------------------------------------------------------------------------
if __name__ == "__main__":
    B, Hs, Ws = 2, 8, 8
    dim, num_heads, mlp_ratio = 32, 4, 4.0
    N = Hs * Ws

    key = jax.random.PRNGKey(0)
    kx, kp = jax.random.split(key)
    x = jax.random.normal(kx, (B, N, dim), jnp.float32)
    params = init_params(kp, dim, num_heads, mlp_ratio)

    fwd = jax.jit(partial(block_forward, H=Hs, W=Ws, num_heads=num_heads))
    y = fwd(x, params)
    jax.block_until_ready(y)

    assert y.shape == (B, N, dim)
    assert bool(jnp.all(jnp.isfinite(y)))

    y_ref = block_reference(x, params, Hs, Ws, num_heads=num_heads)
    max_diff = float(jnp.max(jnp.abs(y - y_ref)))
    assert bool(jnp.allclose(y, y_ref, atol=2e-3, rtol=2e-3)), max_diff

    print("KERNEL_OK")
</pallas_src>

<mosaic_0001>
module attributes {stable_mosaic.version = 11 : i64} {
  func.func @block_kernel(%arg0: i32, %arg1: memref<64x32xf32, #tpu.memory_space<vmem>>, %arg2: memref<1x32xf32, #tpu.memory_space<vmem>>, %arg3: memref<1x32xf32, #tpu.memory_space<vmem>>, %arg4: memref<32x192xbf16, #tpu.memory_space<vmem>>, %arg5: memref<1x32xf32, #tpu.memory_space<vmem>>, %arg6: memref<1x32xf32, #tpu.memory_space<vmem>>, %arg7: memref<1x32xf32, #tpu.memory_space<vmem>>, %arg8: memref<32x128xbf16, #tpu.memory_space<vmem>>, %arg9: memref<1x128xf32, #tpu.memory_space<vmem>>, %arg10: memref<9x128xf32, #tpu.memory_space<vmem>>, %arg11: memref<1x128xf32, #tpu.memory_space<vmem>>, %arg12: memref<128x32xbf16, #tpu.memory_space<vmem>>, %arg13: memref<1x32xf32, #tpu.memory_space<vmem>>, %arg14: memref<64x32xf32, #tpu.memory_space<vmem>>) attributes {dimension_semantics = [#tpu.dimension_semantics<parallel>], iteration_bounds = array<i64: 2>, scalar_prefetch = 0 : i64, scratch_operands = 0 : i64, tpu.core_type = #tpu.core_type<tc>, window_params = [{transform_indices = @transform_0, window_bounds = array<i64: 64, 32>}, {pipeline_mode = #tpu.pipeline_mode<synchronous>, transform_indices = @transform_1, window_bounds = array<i64: 1, 32>}, {pipeline_mode = #tpu.pipeline_mode<synchronous>, transform_indices = @transform_2, window_bounds = array<i64: 1, 32>}, {pipeline_mode = #tpu.pipeline_mode<synchronous>, transform_indices = @transform_3, window_bounds = array<i64: 32, 192>}, {pipeline_mode = #tpu.pipeline_mode<synchronous>, transform_indices = @transform_4, window_bounds = array<i64: 1, 32>}, {pipeline_mode = #tpu.pipeline_mode<synchronous>, transform_indices = @transform_5, window_bounds = array<i64: 1, 32>}, {pipeline_mode = #tpu.pipeline_mode<synchronous>, transform_indices = @transform_6, window_bounds = array<i64: 1, 32>}, {pipeline_mode = #tpu.pipeline_mode<synchronous>, transform_indices = @transform_7, window_bounds = array<i64: 32, 128>}, {pipeline_mode = #tpu.pipeline_mode<synchronous>, transform_indices = @transform_8, window_bounds = array<i64: 1, 128>}, {pipeline_mode = #tpu.pipeline_mode<synchronous>, transform_indices = @transform_9, window_bounds = array<i64: 9, 128>}, {pipeline_mode = #tpu.pipeline_mode<synchronous>, transform_indices = @transform_10, window_bounds = array<i64: 1, 128>}, {pipeline_mode = #tpu.pipeline_mode<synchronous>, transform_indices = @transform_11, window_bounds = array<i64: 128, 32>}, {pipeline_mode = #tpu.pipeline_mode<synchronous>, transform_indices = @transform_12, window_bounds = array<i64: 1, 32>}, {transform_indices = @transform_13, window_bounds = array<i64: 64, 32>}]} {
    %c0 = arith.constant 0 : index
    %c0_0 = arith.constant 0 : index
    %0 = vector.load %arg1[%c0, %c0_0] : memref<64x32xf32, #tpu.memory_space<vmem>>, vector<64x32xf32>
    %c0_1 = arith.constant 0 : index
    %c0_2 = arith.constant 0 : index
    %1 = vector.load %arg2[%c0_1, %c0_2] : memref<1x32xf32, #tpu.memory_space<vmem>>, vector<1x32xf32>
    %c0_3 = arith.constant 0 : index
    %c0_4 = arith.constant 0 : index
    %2 = vector.load %arg3[%c0_3, %c0_4] : memref<1x32xf32, #tpu.memory_space<vmem>>, vector<1x32xf32>
    %cst = arith.constant dense<0.000000e+00> : vector<64xf32>
    %3 = vector.multi_reduction <add>, %0, %cst [1] : vector<64x32xf32> to vector<64xf32>
    %4 = vector.shape_cast %3 : vector<64xf32> to vector<64x1xf32>
    %cst_5 = arith.constant 3.200000e+01 : f32
    %5 = vector.broadcast %cst_5 : f32 to vector<64x1xf32>
    %6 = arith.divf %4, %5 : vector<64x1xf32>
    %7 = vector.broadcast %6 : vector<64x1xf32> to vector<64x32xf32>
    %8 = arith.subf %0, %7 : vector<64x32xf32>
    %9 = arith.mulf %8, %8 : vector<64x32xf32>
    %cst_6 = arith.constant dense<0.000000e+00> : vector<64xf32>
    %10 = vector.multi_reduction <add>, %9, %cst_6 [1] : vector<64x32xf32> to vector<64xf32>
    %11 = vector.shape_cast %10 : vector<64xf32> to vector<64x1xf32>
    %cst_7 = arith.constant 3.200000e+01 : f32
    %12 = vector.broadcast %cst_7 : f32 to vector<64x1xf32>
    %13 = arith.divf %11, %12 : vector<64x1xf32>
    %cst_8 = arith.constant 9.99999974E-6 : f32
    %14 = vector.broadcast %cst_8 : f32 to vector<64x1xf32>
    %15 = arith.addf %13, %14 : vector<64x1xf32>
    %16 = math.rsqrt %15 : vector<64x1xf32>
    %17 = vector.broadcast %16 : vector<64x1xf32> to vector<64x32xf32>
    %18 = arith.mulf %8, %17 : vector<64x32xf32>
    %19 = vector.broadcast %1 : vector<1x32xf32> to vector<64x32xf32>
    %20 = arith.mulf %18, %19 : vector<64x32xf32>
    %21 = vector.broadcast %2 : vector<1x32xf32> to vector<64x32xf32>
    %22 = arith.addf %20, %21 : vector<64x32xf32>
    %23 = arith.truncf %22 : vector<64x32xf32> to vector<64x32xbf16>
    %c0_9 = arith.constant 0 : index
    %c0_10 = arith.constant 0 : index
    %24 = vector.load %arg4[%c0_9, %c0_10] : memref<32x192xbf16, #tpu.memory_space<vmem>>, vector<32x192xbf16>
    %cst_11 = arith.constant dense<0.000000e+00> : vector<64x192xf32>
    %25 = tpu.matmul %23, %24, %cst_11 {dimension_numbers = #tpu.dot_dimension_numbers<[1], [0], [0], [1], [0, 0, 1, 1], [], []>} : vector<64x32xbf16>, vector<32x192xbf16>, vector<64x192xf32> -> vector<64x192xf32>
    %26 = vector.extract_strided_slice %25 {offsets = [0, 0], sizes = [64, 8], strides = [1, 1]} : vector<64x192xf32> to vector<64x8xf32>
    %27 = arith.truncf %26 : vector<64x8xf32> to vector<64x8xbf16>
    %28 = vector.extract_strided_slice %25 {offsets = [0, 32], sizes = [64, 8], strides = [1, 1]} : vector<64x192xf32> to vector<64x8xf32>
    %29 = arith.truncf %28 : vector<64x8xf32> to vector<64x8xbf16>
    %cst_12 = arith.constant dense<0.000000e+00> : vector<64x64xf32>
    %30 = tpu.matmul %27, %29, %cst_12 {dimension_numbers = #tpu.dot_dimension_numbers<[1], [1], [0], [0], [0, 0, 1, 0], [], []>} : vector<64x8xbf16>, vector<64x8xbf16>, vector<64x64xf32> -> vector<64x64xf32>
    %cst_13 = arith.constant dense<0xFF800000> : vector<64xf32>
    %31 = vector.multi_reduction <maximumf>, %30, %cst_13 [1] : vector<64x64xf32> to vector<64xf32>
    %32 = vector.shape_cast %31 : vector<64xf32> to vector<64x1xf32>
    %33 = vector.broadcast %32 : vector<64x1xf32> to vector<64x64xf32>
    %34 = arith.subf %30, %33 : vector<64x64xf32>
    %35 = math.exp %34 : vector<64x64xf32>
    %cst_14 = arith.constant dense<0.000000e+00> : vector<64xf32>
    %36 = vector.multi_reduction <add>, %35, %cst_14 [1] : vector<64x64xf32> to vector<64xf32>
    %37 = vector.shape_cast %36 : vector<64xf32> to vector<64x1xf32>
    %38 = tpu.reciprocal %37 {approx = true} : vector<64x1xf32> -> vector<64x1xf32>
    %39 = vector.broadcast %38 : vector<64x1xf32> to vector<64x64xf32>
    %40 = arith.mulf %35, %39 : vector<64x64xf32>
    %41 = vector.extract_strided_slice %25 {offsets = [0, 64], sizes = [64, 32], strides = [1, 1]} : vector<64x192xf32> to vector<64x32xf32>
    %42 = arith.truncf %41 : vector<64x32xf32> to vector<64x32xbf16>
    %43 = arith.truncf %40 : vector<64x64xf32> to vector<64x64xbf16>
    %cst_15 = arith.constant dense<0.000000e+00> : vector<64x32xf32>
    %44 = tpu.matmul %43, %42, %cst_15 {dimension_numbers = #tpu.dot_dimension_numbers<[1], [0], [0], [1], [0, 0, 1, 1], [], []>} : vector<64x64xbf16>, vector<64x32xbf16>, vector<64x32xf32> -> vector<64x32xf32>
    %45 = vector.extract_strided_slice %25 {offsets = [0, 8], sizes = [64, 8], strides = [1, 1]} : vector<64x192xf32> to vector<64x8xf32>
    %46 = arith.truncf %45 : vector<64x8xf32> to vector<64x8xbf16>
    %47 = vector.extract_strided_slice %25 {offsets = [0, 40], sizes = [64, 8], strides = [1, 1]} : vector<64x192xf32> to vector<64x8xf32>
    %48 = arith.truncf %47 : vector<64x8xf32> to vector<64x8xbf16>
    %cst_16 = arith.constant dense<0.000000e+00> : vector<64x64xf32>
    %49 = tpu.matmul %46, %48, %cst_16 {dimension_numbers = #tpu.dot_dimension_numbers<[1], [1], [0], [0], [0, 0, 1, 0], [], []>} : vector<64x8xbf16>, vector<64x8xbf16>, vector<64x64xf32> -> vector<64x64xf32>
    %cst_17 = arith.constant dense<0xFF800000> : vector<64xf32>
    %50 = vector.multi_reduction <maximumf>, %49, %cst_17 [1] : vector<64x64xf32> to vector<64xf32>
    %51 = vector.shape_cast %50 : vector<64xf32> to vector<64x1xf32>
    %52 = vector.broadcast %51 : vector<64x1xf32> to vector<64x64xf32>
    %53 = arith.subf %49, %52 : vector<64x64xf32>
    %54 = math.exp %53 : vector<64x64xf32>
    %cst_18 = arith.constant dense<0.000000e+00> : vector<64xf32>
    %55 = vector.multi_reduction <add>, %54, %cst_18 [1] : vector<64x64xf32> to vector<64xf32>
    %56 = vector.shape_cast %55 : vector<64xf32> to vector<64x1xf32>
    %57 = tpu.reciprocal %56 {approx = true} : vector<64x1xf32> -> vector<64x1xf32>
    %58 = vector.broadcast %57 : vector<64x1xf32> to vector<64x64xf32>
    %59 = arith.mulf %54, %58 : vector<64x64xf32>
    %60 = vector.extract_strided_slice %25 {offsets = [0, 96], sizes = [64, 32], strides = [1, 1]} : vector<64x192xf32> to vector<64x32xf32>
    %61 = arith.truncf %60 : vector<64x32xf32> to vector<64x32xbf16>
    %62 = arith.truncf %59 : vector<64x64xf32> to vector<64x64xbf16>
    %cst_19 = arith.constant dense<0.000000e+00> : vector<64x32xf32>
    %63 = tpu.matmul %62, %61, %cst_19 {dimension_numbers = #tpu.dot_dimension_numbers<[1], [0], [0], [1], [0, 0, 1, 1], [], []>} : vector<64x64xbf16>, vector<64x32xbf16>, vector<64x32xf32> -> vector<64x32xf32>
    %64 = arith.addf %44, %63 : vector<64x32xf32>
    %65 = vector.extract_strided_slice %25 {offsets = [0, 16], sizes = [64, 8], strides = [1, 1]} : vector<64x192xf32> to vector<64x8xf32>
    %66 = arith.truncf %65 : vector<64x8xf32> to vector<64x8xbf16>
    %67 = vector.extract_strided_slice %25 {offsets = [0, 48], sizes = [64, 8], strides = [1, 1]} : vector<64x192xf32> to vector<64x8xf32>
    %68 = arith.truncf %67 : vector<64x8xf32> to vector<64x8xbf16>
    %cst_20 = arith.constant dense<0.000000e+00> : vector<64x64xf32>
    %69 = tpu.matmul %66, %68, %cst_20 {dimension_numbers = #tpu.dot_dimension_numbers<[1], [1], [0], [0], [0, 0, 1, 0], [], []>} : vector<64x8xbf16>, vector<64x8xbf16>, vector<64x64xf32> -> vector<64x64xf32>
    %cst_21 = arith.constant dense<0xFF800000> : vector<64xf32>
    %70 = vector.multi_reduction <maximumf>, %69, %cst_21 [1] : vector<64x64xf32> to vector<64xf32>
    %71 = vector.shape_cast %70 : vector<64xf32> to vector<64x1xf32>
    %72 = vector.broadcast %71 : vector<64x1xf32> to vector<64x64xf32>
    %73 = arith.subf %69, %72 : vector<64x64xf32>
    %74 = math.exp %73 : vector<64x64xf32>
    %cst_22 = arith.constant dense<0.000000e+00> : vector<64xf32>
    %75 = vector.multi_reduction <add>, %74, %cst_22 [1] : vector<64x64xf32> to vector<64xf32>
    %76 = vector.shape_cast %75 : vector<64xf32> to vector<64x1xf32>
    %77 = tpu.reciprocal %76 {approx = true} : vector<64x1xf32> -> vector<64x1xf32>
    %78 = vector.broadcast %77 : vector<64x1xf32> to vector<64x64xf32>
    %79 = arith.mulf %74, %78 : vector<64x64xf32>
    %80 = vector.extract_strided_slice %25 {offsets = [0, 128], sizes = [64, 32], strides = [1, 1]} : vector<64x192xf32> to vector<64x32xf32>
    %81 = arith.truncf %80 : vector<64x32xf32> to vector<64x32xbf16>
    %82 = arith.truncf %79 : vector<64x64xf32> to vector<64x64xbf16>
    %cst_23 = arith.constant dense<0.000000e+00> : vector<64x32xf32>
    %83 = tpu.matmul %82, %81, %cst_23 {dimension_numbers = #tpu.dot_dimension_numbers<[1], [0], [0], [1], [0, 0, 1, 1], [], []>} : vector<64x64xbf16>, vector<64x32xbf16>, vector<64x32xf32> -> vector<64x32xf32>
    %84 = arith.addf %64, %83 : vector<64x32xf32>
    %85 = vector.extract_strided_slice %25 {offsets = [0, 24], sizes = [64, 8], strides = [1, 1]} : vector<64x192xf32> to vector<64x8xf32>
    %86 = arith.truncf %85 : vector<64x8xf32> to vector<64x8xbf16>
    %87 = vector.extract_strided_slice %25 {offsets = [0, 56], sizes = [64, 8], strides = [1, 1]} : vector<64x192xf32> to vector<64x8xf32>
    %88 = arith.truncf %87 : vector<64x8xf32> to vector<64x8xbf16>
    %cst_24 = arith.constant dense<0.000000e+00> : vector<64x64xf32>
    %89 = tpu.matmul %86, %88, %cst_24 {dimension_numbers = #tpu.dot_dimension_numbers<[1], [1], [0], [0], [0, 0, 1, 0], [], []>} : vector<64x8xbf16>, vector<64x8xbf16>, vector<64x64xf32> -> vector<64x64xf32>
    %cst_25 = arith.constant dense<0xFF800000> : vector<64xf32>
    %90 = vector.multi_reduction <maximumf>, %89, %cst_25 [1] : vector<64x64xf32> to vector<64xf32>
    %91 = vector.shape_cast %90 : vector<64xf32> to vector<64x1xf32>
    %92 = vector.broadcast %91 : vector<64x1xf32> to vector<64x64xf32>
    %93 = arith.subf %89, %92 : vector<64x64xf32>
    %94 = math.exp %93 : vector<64x64xf32>
    %cst_26 = arith.constant dense<0.000000e+00> : vector<64xf32>
    %95 = vector.multi_reduction <add>, %94, %cst_26 [1] : vector<64x64xf32> to vector<64xf32>
    %96 = vector.shape_cast %95 : vector<64xf32> to vector<64x1xf32>
    %97 = tpu.reciprocal %96 {approx = true} : vector<64x1xf32> -> vector<64x1xf32>
    %98 = vector.broadcast %97 : vector<64x1xf32> to vector<64x64xf32>
    %99 = arith.mulf %94, %98 : vector<64x64xf32>
    %100 = vector.extract_strided_slice %25 {offsets = [0, 160], sizes = [64, 32], strides = [1, 1]} : vector<64x192xf32> to vector<64x32xf32>
    %101 = arith.truncf %100 : vector<64x32xf32> to vector<64x32xbf16>
    %102 = arith.truncf %99 : vector<64x64xf32> to vector<64x64xbf16>
    %cst_27 = arith.constant dense<0.000000e+00> : vector<64x32xf32>
    %103 = tpu.matmul %102, %101, %cst_27 {dimension_numbers = #tpu.dot_dimension_numbers<[1], [0], [0], [1], [0, 0, 1, 1], [], []>} : vector<64x64xbf16>, vector<64x32xbf16>, vector<64x32xf32> -> vector<64x32xf32>
    %104 = arith.addf %84, %103 : vector<64x32xf32>
    %105 = arith.addf %0, %104 : vector<64x32xf32>
    %c0_28 = arith.constant 0 : index
    %c0_29 = arith.constant 0 : index
    %106 = vector.load %arg5[%c0_28, %c0_29] : memref<1x32xf32, #tpu.memory_space<vmem>>, vector<1x32xf32>
    %107 = vector.broadcast %106 : vector<1x32xf32> to vector<64x32xf32>
    %108 = arith.addf %105, %107 : vector<64x32xf32>
    %c0_30 = arith.constant 0 : index
    %c0_31 = arith.constant 0 : index
    %109 = vector.load %arg6[%c0_30, %c0_31] : memref<1x32xf32, #tpu.memory_space<vmem>>, vector<1x32xf32>
    %c0_32 = arith.constant 0 : index
    %c0_33 = arith.constant 0 : index
    %110 = vector.load %arg7[%c0_32, %c0_33] : memref<1x32xf32, #tpu.memory_space<vmem>>, vector<1x32xf32>
    %cst_34 = arith.constant dense<0.000000e+00> : vector<64xf32>
    %111 = vector.multi_reduction <add>, %108, %cst_34 [1] : vector<64x32xf32> to vector<64xf32>
    %112 = vector.shape_cast %111 : vector<64xf32> to vector<64x1xf32>
    %cst_35 = arith.constant 3.200000e+01 : f32
    %113 = vector.broadcast %cst_35 : f32 to vector<64x1xf32>
    %114 = arith.divf %112, %113 : vector<64x1xf32>
    %115 = vector.broadcast %114 : vector<64x1xf32> to vector<64x32xf32>
    %116 = arith.subf %108, %115 : vector<64x32xf32>
    %117 = arith.mulf %116, %116 : vector<64x32xf32>
    %cst_36 = arith.constant dense<0.000000e+00> : vector<64xf32>
    %118 = vector.multi_reduction <add>, %117, %cst_36 [1] : vector<64x32xf32> to vector<64xf32>
    %119 = vector.shape_cast %118 : vector<64xf32> to vector<64x1xf32>
    %cst_37 = arith.constant 3.200000e+01 : f32
    %120 = vector.broadcast %cst_37 : f32 to vector<64x1xf32>
    %121 = arith.divf %119, %120 : vector<64x1xf32>
    %cst_38 = arith.constant 9.99999974E-6 : f32
    %122 = vector.broadcast %cst_38 : f32 to vector<64x1xf32>
    %123 = arith.addf %121, %122 : vector<64x1xf32>
    %124 = math.rsqrt %123 : vector<64x1xf32>
    %125 = vector.broadcast %124 : vector<64x1xf32> to vector<64x32xf32>
    %126 = arith.mulf %116, %125 : vector<64x32xf32>
    %127 = vector.broadcast %109 : vector<1x32xf32> to vector<64x32xf32>
    %128 = arith.mulf %126, %127 : vector<64x32xf32>
    %129 = vector.broadcast %110 : vector<1x32xf32> to vector<64x32xf32>
    %130 = arith.addf %128, %129 : vector<64x32xf32>
    %131 = arith.truncf %130 : vector<64x32xf32> to vector<64x32xbf16>
    %c0_39 = arith.constant 0 : index
    %c0_40 = arith.constant 0 : index
    %132 = vector.load %arg8[%c0_39, %c0_40] : memref<32x128xbf16, #tpu.memory_space<vmem>>, vector<32x128xbf16>
    %cst_41 = arith.constant dense<0.000000e+00> : vector<64x128xf32>
    %133 = tpu.matmul %131, %132, %cst_41 {dimension_numbers = #tpu.dot_dimension_numbers<[1], [0], [0], [1], [0, 0, 1, 1], [], []>} : vector<64x32xbf16>, vector<32x128xbf16>, vector<64x128xf32> -> vector<64x128xf32>
    %c0_42 = arith.constant 0 : index
    %c0_43 = arith.constant 0 : index
    %134 = vector.load %arg9[%c0_42, %c0_43] : memref<1x128xf32, #tpu.memory_space<vmem>>, vector<1x128xf32>
    %135 = vector.broadcast %134 : vector<1x128xf32> to vector<64x128xf32>
    %136 = arith.addf %133, %135 : vector<64x128xf32>
    %cst_44 = arith.constant 0.000000e+00 : f32
    %137 = vector.broadcast %cst_44 : f32 to vector<16x128xf32>
    %138 = tpu.concatenate %137, %136, %137 in 0 : vector<16x128xf32>, vector<64x128xf32>, vector<16x128xf32> -> vector<96x128xf32>
    %139 = tpu.iota {dimensions = array<i32: 0>} : vector<64x128xi32>
    %c7_i32 = arith.constant 7 : i32
    %140 = vector.broadcast %c7_i32 : i32 to vector<64x128xi32>
    %141 = arith.andi %139, %140 : vector<64x128xi32>
    %c1_i32 = arith.constant 1 : i32
    %142 = vector.broadcast %c1_i32 : i32 to vector<64x128xi32>
    %143 = arith.cmpi sge, %141, %142 : vector<64x128xi32>
    %c6_i32 = arith.constant 6 : i32
    %144 = vector.broadcast %c6_i32 : i32 to vector<64x128xi32>
    %145 = arith.cmpi sle, %141, %144 : vector<64x128xi32>
    %c0_45 = arith.constant 0 : index
    %c0_46 = arith.constant 0 : index
    %146 = vector.load %arg10[%c0_45, %c0_46] : memref<9x128xf32, #tpu.memory_space<vmem>>, vector<9x128xf32>
    %147 = vector.extract_strided_slice %138 {offsets = [7, 0], sizes = [64, 128], strides = [1, 1]} : vector<96x128xf32> to vector<64x128xf32>
    %cst_47 = arith.constant 0.000000e+00 : f32
    %148 = vector.broadcast %cst_47 : f32 to vector<64x128xf32>
    %149 = arith.select %143, %147, %148 : vector<64x128xi1>, vector<64x128xf32>
    %150 = vector.extract_strided_slice %146 {offsets = [0, 0], sizes = [1, 128], strides = [1, 1]} : vector<9x128xf32> to vector<1x128xf32>
    %151 = vector.broadcast %150 : vector<1x128xf32> to vector<64x128xf32>
    %152 = arith.mulf %149, %151 : vector<64x128xf32>
    %153 = vector.extract_strided_slice %138 {offsets = [8, 0], sizes = [64, 128], strides = [1, 1]} : vector<96x128xf32> to vector<64x128xf32>
    %154 = vector.extract_strided_slice %146 {offsets = [1, 0], sizes = [1, 128], strides = [1, 1]} : vector<9x128xf32> to vector<1x128xf32>
    %155 = vector.broadcast %154 : vector<1x128xf32> to vector<64x128xf32>
    %156 = arith.mulf %153, %155 : vector<64x128xf32>
    %157 = arith.addf %152, %156 : vector<64x128xf32>
    %158 = vector.extract_strided_slice %138 {offsets = [9, 0], sizes = [64, 128], strides = [1, 1]} : vector<96x128xf32> to vector<64x128xf32>
    %cst_48 = arith.constant 0.000000e+00 : f32
    %159 = vector.broadcast %cst_48 : f32 to vector<64x128xf32>
    %160 = arith.select %145, %158, %159 : vector<64x128xi1>, vector<64x128xf32>
    %161 = vector.extract_strided_slice %146 {offsets = [2, 0], sizes = [1, 128], strides = [1, 1]} : vector<9x128xf32> to vector<1x128xf32>
    %162 = vector.broadcast %161 : vector<1x128xf32> to vector<64x128xf32>
    %163 = arith.mulf %160, %162 : vector<64x128xf32>
    %164 = arith.addf %157, %163 : vector<64x128xf32>
    %165 = vector.extract_strided_slice %138 {offsets = [15, 0], sizes = [64, 128], strides = [1, 1]} : vector<96x128xf32> to vector<64x128xf32>
    %cst_49 = arith.constant 0.000000e+00 : f32
    %166 = vector.broadcast %cst_49 : f32 to vector<64x128xf32>
    %167 = arith.select %143, %165, %166 : vector<64x128xi1>, vector<64x128xf32>
    %168 = vector.extract_strided_slice %146 {offsets = [3, 0], sizes = [1, 128], strides = [1, 1]} : vector<9x128xf32> to vector<1x128xf32>
    %169 = vector.broadcast %168 : vector<1x128xf32> to vector<64x128xf32>
    %170 = arith.mulf %167, %169 : vector<64x128xf32>
    %171 = arith.addf %164, %170 : vector<64x128xf32>
    %172 = vector.extract_strided_slice %138 {offsets = [16, 0], sizes = [64, 128], strides = [1, 1]} : vector<96x128xf32> to vector<64x128xf32>
    %173 = vector.extract_strided_slice %146 {offsets = [4, 0], sizes = [1, 128], strides = [1, 1]} : vector<9x128xf32> to vector<1x128xf32>
    %174 = vector.broadcast %173 : vector<1x128xf32> to vector<64x128xf32>
    %175 = arith.mulf %172, %174 : vector<64x128xf32>
    %176 = arith.addf %171, %175 : vector<64x128xf32>
    %177 = vector.extract_strided_slice %138 {offsets = [17, 0], sizes = [64, 128], strides = [1, 1]} : vector<96x128xf32> to vector<64x128xf32>
    %cst_50 = arith.constant 0.000000e+00 : f32
    %178 = vector.broadcast %cst_50 : f32 to vector<64x128xf32>
    %179 = arith.select %145, %177, %178 : vector<64x128xi1>, vector<64x128xf32>
    %180 = vector.extract_strided_slice %146 {offsets = [5, 0], sizes = [1, 128], strides = [1, 1]} : vector<9x128xf32> to vector<1x128xf32>
    %181 = vector.broadcast %180 : vector<1x128xf32> to vector<64x128xf32>
    %182 = arith.mulf %179, %181 : vector<64x128xf32>
    %183 = arith.addf %176, %182 : vector<64x128xf32>
    %184 = vector.extract_strided_slice %138 {offsets = [23, 0], sizes = [64, 128], strides = [1, 1]} : vector<96x128xf32> to vector<64x128xf32>
    %cst_51 = arith.constant 0.000000e+00 : f32
    %185 = vector.broadcast %cst_51 : f32 to vector<64x128xf32>
    %186 = arith.select %143, %184, %185 : vector<64x128xi1>, vector<64x128xf32>
    %187 = vector.extract_strided_slice %146 {offsets = [6, 0], sizes = [1, 128], strides = [1, 1]} : vector<9x128xf32> to vector<1x128xf32>
    %188 = vector.broadcast %187 : vector<1x128xf32> to vector<64x128xf32>
    %189 = arith.mulf %186, %188 : vector<64x128xf32>
    %190 = arith.addf %183, %189 : vector<64x128xf32>
    %191 = vector.extract_strided_slice %138 {offsets = [24, 0], sizes = [64, 128], strides = [1, 1]} : vector<96x128xf32> to vector<64x128xf32>
    %192 = vector.extract_strided_slice %146 {offsets = [7, 0], sizes = [1, 128], strides = [1, 1]} : vector<9x128xf32> to vector<1x128xf32>
    %193 = vector.broadcast %192 : vector<1x128xf32> to vector<64x128xf32>
    %194 = arith.mulf %191, %193 : vector<64x128xf32>
    %195 = arith.addf %190, %194 : vector<64x128xf32>
    %196 = vector.extract_strided_slice %138 {offsets = [25, 0], sizes = [64, 128], strides = [1, 1]} : vector<96x128xf32> to vector<64x128xf32>
    %cst_52 = arith.constant 0.000000e+00 : f32
    %197 = vector.broadcast %cst_52 : f32 to vector<64x128xf32>
    %198 = arith.select %145, %196, %197 : vector<64x128xi1>, vector<64x128xf32>
    %199 = vector.extract_strided_slice %146 {offsets = [8, 0], sizes = [1, 128], strides = [1, 1]} : vector<9x128xf32> to vector<1x128xf32>
    %200 = vector.broadcast %199 : vector<1x128xf32> to vector<64x128xf32>
    %201 = arith.mulf %198, %200 : vector<64x128xf32>
    %202 = arith.addf %195, %201 : vector<64x128xf32>
    %c0_53 = arith.constant 0 : index
    %c0_54 = arith.constant 0 : index
    %203 = vector.load %arg11[%c0_53, %c0_54] : memref<1x128xf32, #tpu.memory_space<vmem>>, vector<1x128xf32>
    %204 = vector.broadcast %203 : vector<1x128xf32> to vector<64x128xf32>
    %205 = arith.addf %202, %204 : vector<64x128xf32>
    %cst_55 = arith.constant 5.000000e-01 : f32
    %206 = vector.broadcast %cst_55 : f32 to vector<64x128xf32>
    %207 = arith.mulf %206, %205 : vector<64x128xf32>
    %cst_56 = arith.constant 0.707106769 : f32
    %208 = vector.broadcast %cst_56 : f32 to vector<64x128xf32>
    %209 = arith.mulf %205, %208 : vector<64x128xf32>
    %210 = math.erf %209 : vector<64x128xf32>
    %cst_57 = arith.constant 1.000000e+00 : f32
    %211 = vector.broadcast %cst_57 : f32 to vector<64x128xf32>
    %212 = arith.addf %211, %210 : vector<64x128xf32>
    %213 = arith.mulf %207, %212 : vector<64x128xf32>
    %214 = arith.truncf %213 : vector<64x128xf32> to vector<64x128xbf16>
    %c0_58 = arith.constant 0 : index
    %c0_59 = arith.constant 0 : index
    %215 = vector.load %arg12[%c0_58, %c0_59] : memref<128x32xbf16, #tpu.memory_space<vmem>>, vector<128x32xbf16>
    %cst_60 = arith.constant dense<0.000000e+00> : vector<64x32xf32>
    %216 = tpu.matmul %214, %215, %cst_60 {dimension_numbers = #tpu.dot_dimension_numbers<[1], [0], [0], [1], [0, 0, 1, 1], [], []>} : vector<64x128xbf16>, vector<128x32xbf16>, vector<64x32xf32> -> vector<64x32xf32>
    %c0_61 = arith.constant 0 : index
    %c0_62 = arith.constant 0 : index
    %217 = vector.load %arg13[%c0_61, %c0_62] : memref<1x32xf32, #tpu.memory_space<vmem>>, vector<1x32xf32>
    %218 = vector.broadcast %217 : vector<1x32xf32> to vector<64x32xf32>
    %219 = arith.addf %216, %218 : vector<64x32xf32>
    %220 = arith.addf %108, %219 : vector<64x32xf32>
    %c0_63 = arith.constant 0 : index
    %c0_64 = arith.constant 0 : index
    %221 = vector.load %arg14[%c0_63, %c0_64] : memref<64x32xf32, #tpu.memory_space<vmem>>, vector<64x32xf32>
    tpu.vector_store %arg14[%c0_63, %c0_64], %220 {strides = array<i32>} : memref<64x32xf32, #tpu.memory_space<vmem>>, vector<64x32xf32>,
    return
  }
  func.func @transform_0(%arg0: i32) -> (i32, i32) {
    %c0_i32 = arith.constant 0 : i32
    %c0_i32_0 = arith.constant 0 : i32
    return %arg0, %c0_i32 : i32, i32
  }
  func.func @transform_1(%arg0: i32) -> (i32, i32) {
    %c0_i32 = arith.constant 0 : i32
    %c0_i32_0 = arith.constant 0 : i32
    %c0_i32_1 = arith.constant 0 : i32
    return %c0_i32, %c0_i32_0 : i32, i32
  }
  func.func @transform_2(%arg0: i32) -> (i32, i32) {
    %c0_i32 = arith.constant 0 : i32
    %c0_i32_0 = arith.constant 0 : i32
    %c0_i32_1 = arith.constant 0 : i32
    return %c0_i32, %c0_i32_0 : i32, i32
  }
  func.func @transform_3(%arg0: i32) -> (i32, i32) {
    %c0_i32 = arith.constant 0 : i32
    %c0_i32_0 = arith.constant 0 : i32
    %c0_i32_1 = arith.constant 0 : i32
    return %c0_i32, %c0_i32_0 : i32, i32
  }
  func.func @transform_4(%arg0: i32) -> (i32, i32) {
    %c0_i32 = arith.constant 0 : i32
    %c0_i32_0 = arith.constant 0 : i32
    %c0_i32_1 = arith.constant 0 : i32
    return %c0_i32, %c0_i32_0 : i32, i32
  }
  func.func @transform_5(%arg0: i32) -> (i32, i32) {
    %c0_i32 = arith.constant 0 : i32
    %c0_i32_0 = arith.constant 0 : i32
    %c0_i32_1 = arith.constant 0 : i32
    return %c0_i32, %c0_i32_0 : i32, i32
  }
  func.func @transform_6(%arg0: i32) -> (i32, i32) {
    %c0_i32 = arith.constant 0 : i32
    %c0_i32_0 = arith.constant 0 : i32
    %c0_i32_1 = arith.constant 0 : i32
    return %c0_i32, %c0_i32_0 : i32, i32
  }
  func.func @transform_7(%arg0: i32) -> (i32, i32) {
    %c0_i32 = arith.constant 0 : i32
    %c0_i32_0 = arith.constant 0 : i32
    %c0_i32_1 = arith.constant 0 : i32
    return %c0_i32, %c0_i32_0 : i32, i32
  }
  func.func @transform_8(%arg0: i32) -> (i32, i32) {
    %c0_i32 = arith.constant 0 : i32
    %c0_i32_0 = arith.constant 0 : i32
    %c0_i32_1 = arith.constant 0 : i32
    return %c0_i32, %c0_i32_0 : i32, i32
  }
  func.func @transform_9(%arg0: i32) -> (i32, i32) {
    %c0_i32 = arith.constant 0 : i32
    %c0_i32_0 = arith.constant 0 : i32
    %c0_i32_1 = arith.constant 0 : i32
    return %c0_i32, %c0_i32_0 : i32, i32
  }
  func.func @transform_10(%arg0: i32) -> (i32, i32) {
    %c0_i32 = arith.constant 0 : i32
    %c0_i32_0 = arith.constant 0 : i32
    %c0_i32_1 = arith.constant 0 : i32
    return %c0_i32, %c0_i32_0 : i32, i32
  }
  func.func @transform_11(%arg0: i32) -> (i32, i32) {
    %c0_i32 = arith.constant 0 : i32
    %c0_i32_0 = arith.constant 0 : i32
    %c0_i32_1 = arith.constant 0 : i32
    return %c0_i32, %c0_i32_0 : i32, i32
  }
  func.func @transform_12(%arg0: i32) -> (i32, i32) {
    %c0_i32 = arith.constant 0 : i32
    %c0_i32_0 = arith.constant 0 : i32
    %c0_i32_1 = arith.constant 0 : i32
    return %c0_i32, %c0_i32_0 : i32, i32
  }
  func.func @transform_13(%arg0: i32) -> (i32, i32) {
    %c0_i32 = arith.constant 0 : i32
    %c0_i32_0 = arith.constant 0 : i32
    return %arg0, %c0_i32 : i32, i32
  }
}

</mosaic_0001>

<bundles_post_ra>
// kernel: block_forward.1
= control target key start
LH: loop header
LB: loop body
LE: loop exit
PB: predicated region body
PF: predicated region fallthrough
CT: control target
= control target key end

     0   :  { %s3380_s25 = smov 0   ;;  %s4655_s0 = inlined_call_operand.vmem [shape: f32[128,32], index: 0, kind: input, shape index: {}]   ;;  %s4656_s1 = inlined_call_operand.vmem [shape: f32[1,32], index: 1, kind: input, shape index: {}]   ;;  %s4657_s2 = inlined_call_operand.vmem [shape: f32[1,32], index: 2, kind: input, shape index: {}]   ;;  %s4658_s3 = inlined_call_operand.vmem [shape: bf16[32,192], index: 3, kind: input, shape index: {}]   ;;  %s4659_s4 = inlined_call_operand.vmem [shape: f32[1,32], index: 4, kind: input, shape index: {}]   ;;  %s4660_s5 = inlined_call_operand.vmem [shape: f32[1,32], index: 5, kind: input, shape index: {}]   ;;  %s4661_s6 = inlined_call_operand.vmem [shape: f32[1,32], index: 6, kind: input, shape index: {}]   ;;  %s4662_s7 = inlined_call_operand.vmem [shape: bf16[32,128], index: 7, kind: input, shape index: {}]   ;;  %s4663_s8 = inlined_call_operand.vmem [shape: f32[1,128], index: 8, kind: input, shape index: {}]   ;;  %s4664_s9 = inlined_call_operand.vmem [shape: f32[9,128], index: 9, kind: input, shape index: {}]   ;;  %s4665_s10 = inlined_call_operand.vmem [shape: f32[1,128], index: 10, kind: input, shape index: {}]   ;;  %s4666_s11 = inlined_call_operand.vmem [shape: bf16[128,32], index: 11, kind: input, shape index: {}]   ;;  %s4667_s12 = inlined_call_operand.vmem [shape: f32[1,32], index: 12, kind: input, shape index: {}]   ;;  %s4668_s13 = inlined_call_operand.vmem [shape: f32[128,32], index: 13, kind: output, shape index: {}]  }
   0x1 LB: > { %s2712_s26 = sadd.s32 4294967295, %s3297_s25   ;;  %p2716_p0 = scmp.ge.s32.totalorder %s3297_s25, 1  ;;  %s3297_s25 = sphi %s3380_s25, %s23_s25  }
   0x2   : > { %p388_p1 = scmp.lt.s32.totalorder %s3297_s25, 3 }
   0x4   : > { %p389_p2 = pnand %p2716_p0, %p388_p1 }
   0x6   : > { %392 = sbr.rel (%p389_p2) target bundleno = 2485 (0x9b5), region = 72 }
   0xd   : > { %s2717_s27 = sshll.u32 %s2712_s26, 3  ;;  %vm4683_vm0 = vcmask 261120   ;;  %v3091_v56 = vld [vmem:[%s4658_s3 + $0x4] ss:$8 sps:$4 sm:$0xff]   ;;  %v3093_v57 = vld [vmem:[%s4658_s3] ss:$8 sps:$4 sm:$0xff]  }
   0xe   : > { %p433_p3 = scmp.lt.s32.totalorder %s2717_s27, 15  ;;  %629 = vmatprep.subr.bf16.mxu1 %v3091_v56  ;;  %v3094_v58 = vld [vmem:[%s4658_s3 + $0x14] ss:$8 sps:$4 sm:$0xff]   ;;  %v3096_v59 = vld [vmem:[%s4658_s3 + $0x10] ss:$8 sps:$4 sm:$0xff]   ;;  %v3299_v60 = vmov 0  }
   0xf   : > { %630 = vmatpush1.bf16.msra.mxu1 %v3093_v57  ;;  %661 = vmatprep.mubr.bf16.mxu1 %v3299_v60  ;;  %vm718_vm1 = vcmask 64512   ;;  %s3300_s30 = smov 88   ;;  %s3301_s15 = smov 96   ;;  %vm808_vm2 = vcmask 523264   ;;  %vm4684_vm5 = vcmask 1040384   ;;  %vm2230_vm7 = vcmask 1046528  }
  0x10   : > { %s4760_s27 = smov (!%p433_p3, %s2717_s27), 15  ;;  %631 = vmatprep.subr.bf16.mxu1 %v3094_v58  ;;  %s3302_s16 = smov 80  }
  0x11   : > { %s2718_s28 = sshll.u32 %s4760_s27, 3  ;;  %s3303_s17 = smov 120  }
  0x12   : > { %s3396_s14 = scalar_lea.vmem %s4655_s0, %s2718_s28  ;;  %s3304_s18 = smov 112  }
  0x13   : > { %v445_v0 = vld [vmem:[%s3396_s14] sm:$0xff]  ;;  %v447_v1 = vld [vmem:[%s3396_s14 + $0x10] sm:$0xff]  ;;  %v446_v2 = vld [vmem:[%s3396_s14 + $0x8] sm:$0xff]  ;;  %632 = vmatpush1.bf16.msra.mxu1 %v3096_v59  ;;  %s3305_s19 = smov 72   ;;  %s3306_s20 = smov 104  }
  0x14   : > { %v456_v3 = vsel %vm4683_vm0, %v445_v0, 0.0  ;;  %v462_v4 = vsel %vm4683_vm0, %v447_v1, 0.0  ;;  %v448_v5 = vld [vmem:[%s3396_s14 + $0x18] sm:$0xff]  ;;  %v459_v6 = vsel %vm4683_vm0, %v446_v2, 0.0  ;;  %v449_v7 = vld [vmem:[%s3396_s14 + $0x20] sm:$0xff]  ;;  %v450_v9 = vld [vmem:[%s3396_s14 + $0x28] sm:$0xff] }
  0x15   : > { %457 = vadd.xlane.f32.xlu0 %v456_v3  ;;  %463 = vadd.xlane.f32.xlu1 %v462_v4  ;;  %v465_v8 = vsel %vm4683_vm0, %v448_v5, 0.0  ;;  %v468_v10 = vsel %vm4683_vm0, %v449_v7, 0.0  ;;  %v471_v11 = vsel %vm4683_vm0, %v450_v9, 0.0  ;;  %v451_v12 = vld [vmem:[%s3396_s14 + $0x30] sm:$0xff]  ;;  %v452_v13 = vld [vmem:[%s3396_s14 + $0x38] sm:$0xff]  ;;  %s3307_s21 = smov 32  }
  0x16   : > { %v474_v14 = vsel %vm4683_vm0, %v451_v12, 0.0  ;;  %v477_v15 = vsel %vm4683_vm0, %v452_v13, 0.0  ;;  %s3308_s22 = smov 64  }
  0x19   : > { %460 = vadd.xlane.f32.xlu0 %v459_v6  ;;  %466 = vadd.xlane.f32.xlu1 %v465_v8 }
  0x1d   : > { %469 = vadd.xlane.f32.xlu0 %v468_v10  ;;  %472 = vadd.xlane.f32.xlu1 %v471_v11 }
  0x21   : > { %475 = vadd.xlane.f32.xlu0 %v474_v14  ;;  %478 = vadd.xlane.f32.xlu1 %v477_v15 }
  0xa2   : > { %v458_v16 = vpop.xlane.xlu0 %457  ;;  %v464_v17 = vpop.xlane.xlu1 %463 }
  0xa3   : > { %v481_v18 = vmul.f32 0.03125, %v458_v16  ;;  %v483_v19 = vmul.f32 0.03125, %v464_v17 }
  0xa5   : > { %v3414_v20 = vsub.f32 %v445_v0, %v481_v18  ;;  %v3416_v21 = vsub.f32 %v447_v1, %v483_v19 }
  0xa6   : > { %v461_v22 = vpop.xlane.xlu0 %460  ;;  %v467_v23 = vpop.xlane.xlu1 %466 }
  0xa7   : > { %v482_v24 = vmul.f32 0.03125, %v461_v22  ;;  %v484_v25 = vmul.f32 0.03125, %v467_v23  ;;  %v497_v26 = vmul.f32 %v3414_v20, %v3414_v20  ;;  %v499_v27 = vmul.f32 %v3416_v21, %v3416_v21  ;;  %v2721_v22 = vld [vmem:[%s4656_s1] ss:$0 sm:$0xff] }
  0xa9   : > { %v3422_v28 = vsub.f32 %v446_v2, %v482_v24  ;;  %v3424_v29 = vsub.f32 %v448_v5, %v484_v25  ;;  %v505_v30 = vsel %vm4683_vm0, %v497_v26, 0.0  ;;  %v511_v33 = vsel %vm4683_vm0, %v499_v27, 0.0 }
  0xaa   : > { %506 = vadd.xlane.f32.xlu0 %v505_v30  ;;  %v470_v31 = vpop.xlane.xlu0 %469  ;;  %v473_v32 = vpop.xlane.xlu1 %472 }
  0xab   : > { %v485_v34 = vmul.f32 0.03125, %v470_v31  ;;  %v486_v35 = vmul.f32 0.03125, %v473_v32  ;;  %v498_v36 = vmul.f32 %v3422_v28, %v3422_v28  ;;  %v500_v37 = vmul.f32 %v3424_v29, %v3424_v29  ;;  %v2722_v31 = vld [vmem:[%s4657_s2] ss:$0 sm:$0xff] }
  0xad   : > { %v3432_v38 = vsub.f32 %v449_v7, %v485_v34  ;;  %v3434_v39 = vsub.f32 %v450_v9, %v486_v35  ;;  %v508_v40 = vsel %vm4683_vm0, %v498_v36, 0.0  ;;  %v514_v43 = vsel %vm4683_vm0, %v500_v37, 0.0 }
  0xae   : > { %512 = vadd.xlane.f32.xlu0 %v511_v33  ;;  %509 = vadd.xlane.f32.xlu1 %v508_v40  ;;  %v476_v41 = vpop.xlane.xlu0 %475  ;;  %v479_v42 = vpop.xlane.xlu1 %478 }
  0xaf   : > { %v487_v44 = vmul.f32 0.03125, %v476_v41  ;;  %v488_v45 = vmul.f32 0.03125, %v479_v42  ;;  %v501_v46 = vmul.f32 %v3432_v38, %v3432_v38  ;;  %v502_v47 = vmul.f32 %v3434_v39, %v3434_v39 }
  0xb1   : > { %v3442_v48 = vsub.f32 %v451_v12, %v487_v44  ;;  %v3444_v49 = vsub.f32 %v452_v13, %v488_v45  ;;  %v517_v50 = vsel %vm4683_vm0, %v501_v46, 0.0  ;;  %v520_v51 = vsel %vm4683_vm0, %v502_v47, 0.0 }
  0xb2   : > { %515 = vadd.xlane.f32.xlu1 %v514_v43  ;;  %518 = vadd.xlane.f32.xlu0 %v517_v50 }
  0xb3   : > { %v503_v52 = vmul.f32 %v3442_v48, %v3442_v48  ;;  %v504_v53 = vmul.f32 %v3444_v49, %v3444_v49 }
  0xb5   : > { %v523_v54 = vsel %vm4683_vm0, %v503_v52, 0.0  ;;  %v526_v55 = vsel %vm4683_vm0, %v504_v53, 0.0 }
  0xb6   : > { %521 = vadd.xlane.f32.xlu1 %v520_v51  ;;  %524 = vadd.xlane.f32.xlu0 %v523_v54 }
  0xba   : > { %527 = vadd.xlane.f32.xlu1 %v526_v55 }
 0x137   : > { %v507_v61 = vpop.xlane.xlu0 %506 }
 0x138   : > { %v529_v62 = vmul.f32 0.03125, %v507_v61 }
 0x13a   : > { %v537_v63 = vadd.f32 1e-05, %v529_v62 }
 0x13b   : > { %v510_v0 = vpop.xlane.xlu1 %509  ;;  %v513_v1 = vpop.xlane.xlu0 %512 }
 0x13c   : > { %3107 = vrsqrt.f32 %v537_v63  ;;  %v530_v2 = vmul.f32 0.03125, %v510_v0  ;;  %v531_v3 = vmul.f32 0.03125, %v513_v1 }
 0x13e   : > { %v538_v4 = vadd.f32 1e-05, %v530_v2  ;;  %v539_v5 = vadd.f32 1e-05, %v531_v3 }
 0x13f   : > { %v516_v6 = vpop.xlane.xlu1 %515  ;;  %v519_v7 = vpop.xlane.xlu0 %518 }
 0x140   : > { %3109 = vrsqrt.f32 %v538_v4  ;;  %v532_v8 = vmul.f32 0.03125, %v516_v6  ;;  %v533_v10 = vmul.f32 0.03125, %v519_v7 }
 0x141   : > { %3111 = vrsqrt.f32 %v539_v5 }
 0x142   : > { %v540_v9 = vadd.f32 1e-05, %v532_v8  ;;  %v541_v14 = vadd.f32 1e-05, %v533_v10 }
 0x143   : > { %v522_v11 = vpop.xlane.xlu1 %521  ;;  %v525_v16 = vpop.xlane.xlu0 %524 }
 0x144   : > { %3113 = vrsqrt.f32 %v540_v9  ;;  %v534_v12 = vmul.f32 0.03125, %v522_v11  ;;  %v535_v24 = vmul.f32 0.03125, %v525_v16 }
 0x146   : > { %v3108_v13 = vpop.eup %3107  ;;  %v542_v15 = vadd.f32 1e-05, %v534_v12  ;;  %v543_v33 = vadd.f32 1e-05, %v535_v24 }
 0x147   : > { %v528_v17 = vpop.xlane.xlu1 %527  ;;  %v553_v18 = vmul.f32 %v3108_v13, %v3414_v20 }
 0x148   : > { %3115 = vrsqrt.f32 %v542_v15  ;;  %v536_v19 = vmul.f32 0.03125, %v528_v17 }
 0x149   : > { %3117 = vrsqrt.f32 %v541_v14  ;;  %v567_v26 = vmul.f32 %v2721_v22, %v553_v18 }
 0x14a   : > { %v3110_v23 = vpop.eup %3109  ;;  %v544_v30 = vadd.f32 1e-05, %v536_v19 }
 0x14b   : > { %v554_v25 = vmul.f32 %v3110_v23, %v3422_v28  ;;  %v3112_v27 = vpop.eup %3111  ;;  %v581_v34 = vadd.f32 %v2722_v31, %v567_v26 }
 0x14c   : > { %v555_v36 = vmul.f32 %v3112_v27, %v3416_v21  ;;  %3119 = vrsqrt.f32 %v544_v30 }
 0x14d   : > { %v568_v32 = vmul.f32 %v2721_v22, %v554_v25  ;;  %3121 = vrsqrt.f32 %v543_v33 }
 0x14e   : > { %v3114_v20 = vpop.eup %3113  ;;  %v569_v42 = vmul.f32 %v2721_v22, %v555_v36 }
 0x14f   : > { %v582_v35 = vadd.f32 %v2722_v31, %v568_v32  ;;  %v556_v37 = vmul.f32 %v3114_v20, %v3424_v29 }
 0x150   : > { %v583_v46 = vadd.f32 %v2722_v31, %v569_v42 }
 0x151   : > { %v589_v40 = vpack.c.bf16 %v582_v35, %v581_v34  ;;  %v570_v41 = vmul.f32 %v2721_v22, %v556_v37 }
 0x152   : > { %v3116_v28 = vpop.eup %3115 }
 0x153   : > { %2727 = vmatmul.mubr.msk.bf16.vlgmr.msra.gmra.mrb[0].mxu1 %vm4683_vm0, %v589_v40  ;;  %v3118_v43 = vpop.eup %3117  ;;  %v584_v44 = vadd.f32 %v2722_v31, %v570_v41  ;;  %v558_v45 = vmul.f32 %v3116_v28, %v3434_v39 }
 0x154   : > { %671 = vmatprep.mubr.bf16.mxu1 %v3299_v60  ;;  %v557_v47 = vmul.f32 %v3118_v43, %v3432_v38 }
 0x155   : > { %v590_v21 = vpack.c.bf16 %v584_v44, %v583_v46  ;;  %v572_v50 = vmul.f32 %v2721_v22, %v558_v45 }
 0x156   : > { %v3120_v29 = vpop.eup %3119  ;;  %v571_v51 = vmul.f32 %v2721_v22, %v557_v47 }
 0x157   : > { %v3122_v52 = vpop.eup %3121  ;;  %v586_v53 = vadd.f32 %v2722_v31, %v572_v50  ;;  %v560_v54 = vmul.f32 %v3120_v29, %v3444_v49 }
 0x158   : > { %v585_v55 = vadd.f32 %v2722_v31, %v571_v51  ;;  %v559_v56 = vmul.f32 %v3122_v52, %v3442_v48 }
 0x159   : > { %v574_v39 = vmul.f32 %v2721_v22, %v560_v54 }
 0x15a   : > { %v591_v57 = vpack.c.bf16 %v586_v53, %v585_v55  ;;  %v573_v38 = vmul.f32 %v2721_v22, %v559_v56 }
 0x15b   : > { %2728 = vmatmul.mubr.msk.bf16.gmra.mrb[4].mxu1 %vm4683_vm0, %v590_v21  ;;  %v588_v58 = vadd.f32 %v2722_v31, %v574_v39 }
 0x15c   : > { %681 = vmatprep.mubr.bf16.mxu1 %v3299_v60  ;;  %v587_v59 = vadd.f32 %v2722_v31, %v573_v38 }
 0x15e   : > { %v592_v61 = vpack.c.bf16 %v588_v58, %v587_v59 }
 0x163   : > { %2729 = vmatmul.mubr.msk.bf16.gmra.mrb[8].mxu1 %vm4683_vm0, %v591_v57 }
 0x164   : > { %691 = vmatprep.mubr.bf16.mxu1 %v3299_v60 }
 0x16b   : > { %2730 = vmatmul.mubr.msk.bf16.gmra.mrb[12].mxu1 %vm4683_vm0, %v592_v61 }
 0x226   : > { %v663_v62 = vpop.f32.mrb[0].mxu1 }
 0x227   : > { %v665_v63 = vpop.f32.mrb[1].mxu1 }
 0x228   : > { %v667_v0 = vpop.f32.mrb[2].mxu1 }
 0x229   : > { %v3488_v49 = vpack.c.bf16 %v667_v0, %v663_v62  ;;  %v669_v1 = vpop.f32.mrb[3].mxu1 }
 0x22a   : > { %v3490_v48 = vpack.c.bf16 %v669_v1, %v665_v63 }
 0x22b   : > { %909 = vrot.lane.b32.xlu0 %v3488_v49, %s3300_s30  ;;  %2876 = vmatprep.mubr.msk.bf16.mxu1 %vm718_vm1, %v3488_v49 }
 0x22e   : > { %v673_v60 = vpop.f32.mrb[4].mxu1 }
 0x22f   : > { %710 = vrot.lane.b32.xlu0 %v3488_v49, %s3301_s15  ;;  %v675_v2 = vpop.f32.mrb[5].mxu1 }
 0x230   : > { %v677_v3 = vpop.f32.mrb[6].mxu1 }
 0x231   : > { %v3498_v4 = vpack.c.bf16 %v677_v3, %v673_v60  ;;  %v679_v5 = vpop.f32.mrb[7].mxu1 }
 0x232   : > { %v3500_v6 = vpack.c.bf16 %v679_v5, %v675_v2 }
 0x233   : > { %1284 = vrot.lane.b32.xlu0 %v3488_v49, %s3302_s16  ;;  %911 = vrot.lane.b32.xlu1 %v3498_v4, %s3300_s30 }
 0x236   : > { %v683_v7 = vpop.f32.mrb[8].mxu1 }
 0x237   : > { %712 = vrot.lane.b32.xlu0 %v3498_v4, %s3301_s15  ;;  %v685_v8 = vpop.f32.mrb[9].mxu1 }
 0x238   : > { %v687_v9 = vpop.f32.mrb[10].mxu1 }
 0x239   : > { %v3508_v10 = vpack.c.bf16 %v687_v9, %v683_v7  ;;  %v689_v11 = vpop.f32.mrb[11].mxu1 }
 0x23a   : > { %v3510_v12 = vpack.c.bf16 %v689_v11, %v685_v8 }
 0x23b   : > { %714 = vrot.lane.b32.xlu0 %v3508_v10, %s3301_s15  ;;  %913 = vrot.lane.b32.xlu1 %v3508_v10, %s3300_s30 }
 0x23e   : > { %v693_v13 = vpop.f32.mrb[12].mxu1 }
 0x23f   : > { %905 = vrot.lane.b32.xlu0 %v3508_v10, %s3303_s17  ;;  %v695_v14 = vpop.f32.mrb[13].mxu1 }
 0x240   : > { %v697_v15 = vpop.f32.mrb[14].mxu1 }
 0x241   : > { %v3517_v16 = vpack.c.bf16 %v697_v15, %v693_v13  ;;  %v699_v17 = vpop.f32.mrb[15].mxu1 }
 0x242   : > { %v3519_v18 = vpack.c.bf16 %v699_v17, %v695_v14 }
 0x243   : > { %907 = vrot.lane.b32.xlu0 %v3517_v16, %s3303_s17  ;;  %915 = vrot.lane.b32.xlu1 %v3517_v16, %s3300_s30 }
 0x247   : > { %1276 = vrot.lane.b32.xlu0 %v3488_v49, %s3304_s18  ;;  %901 = vrot.lane.b32.xlu1 %v3488_v49, %s3303_s17 }
 0x24b   : > { %1278 = vrot.lane.b32.xlu0 %v3498_v4, %s3304_s18  ;;  %903 = vrot.lane.b32.xlu1 %v3498_v4, %s3303_s17 }
 0x24f   : > { %1574 = vrot.lane.b32.xlu0 %v3508_v10, %s3305_s19  ;;  %1286 = vrot.lane.b32.xlu1 %v3498_v4, %s3302_s16 }
 0x253   : > { %1282 = vrot.lane.b32.xlu0 %v3517_v16, %s3304_s18  ;;  %1288 = vrot.lane.b32.xlu1 %v3508_v10, %s3302_s16 }
 0x257   : > { %1562 = vrot.lane.b32.xlu0 %v3488_v49, %s3306_s20  ;;  %716 = vrot.lane.b32.xlu1 %v3517_v16, %s3301_s15 }
 0x25b   : > { %1566 = vrot.lane.b32.xlu0 %v3508_v10, %s3306_s20  ;;  %1290 = vrot.lane.b32.xlu1 %v3517_v16, %s3302_s16 }
 0x25f   : > { %1098 = vrot.lane.b32.xlu0 %v3488_v49, %s3307_s21  ;;  %1570 = vrot.lane.b32.xlu1 %v3488_v49, %s3305_s19 }
 0x263   : > { %1102 = vrot.lane.b32.xlu0 %v3508_v10, %s3307_s21  ;;  %1572 = vrot.lane.b32.xlu1 %v3498_v4, %s3305_s19 }
 0x267   : > { %1191 = vrot.lane.b32.xlu0 %v3508_v10, %s3308_s22  ;;  %1280 = vrot.lane.b32.xlu1 %v3508_v10, %s3304_s18 }
 0x26b   : > { %1104 = vrot.lane.b32.xlu0 %v3517_v16, %s3307_s21  ;;  %1576 = vrot.lane.b32.xlu1 %v3517_v16, %s3305_s19  ;;  %s442_s19 = scalar_lea.vmem %s4668_s13, %s2718_s28 }
 0x26f   : > { %1564 = vrot.lane.b32.xlu1 %v3498_v4, %s3306_s20 }
 0x273   : > { %1568 = vrot.lane.b32.xlu1 %v3517_v16, %s3306_s20 }
 0x277   : > { %1100 = vrot.lane.b32.xlu1 %v3498_v4, %s3307_s21 }
 0x27b   : > { %1187 = vrot.lane.b32.xlu1 %v3488_v49, %s3308_s22 }
 0x27f   : > { %1189 = vrot.lane.b32.xlu1 %v3498_v4, %s3308_s22 }
 0x29d   : > { %v910_v19 = vpop.permute.xlu0 %909 }
 0x29e   : > { %3060 = vmatprep.subr.msk.bf16.mxu0 %vm718_vm1, %v910_v19  ;;  %v930_v22 = vsel %vm718_vm1, %v910_v19, 0 }
 0x29f   : > { %2885 = vmatpush3.bf16.xpose.msra.mxu0 %v930_v22 }
 0x2a1   : > { %v711_v23 = vpop.permute.xlu0 %710 }
 0x2a2   : > { %3056 = vmatprep.subr.msk.bf16.mxu1 %vm718_vm1, %v711_v23  ;;  %v732_v24 = vsel %vm718_vm1, %v711_v23, 0 }
 0x2a3   : > { %2869 = vmatpush3.bf16.xpose.msra.mxu1 %v732_v24 }
 0x2a5   : > { %v912_v25 = vpop.permute.xlu1 %911  ;;  %v1285_v26 = vpop.permute.xlu0 %1284 }
 0x2a6   : > { %3061 = vmatprep.subr.msk.bf16.mxu0 %vm718_vm1, %v912_v25  ;;  %v933_v27 = vsel %vm718_vm1, %v912_v25, 0  ;;  %v1305_v44 = vsel %vm718_vm1, %v1285_v26, 0 }
 0x2a7   : > { %2887 = vmatpush3.bf16.xpose.msra.mxu0 %v933_v27 }
 0x2a9   : > { %v713_v30 = vpop.permute.xlu0 %712 }
 0x2aa   : > { %3057 = vmatprep.subr.msk.bf16.mxu1 %vm718_vm1, %v713_v30  ;;  %v735_v31 = vsel %vm718_vm1, %v713_v30, 0 }
 0x2ab   : > { %2871 = vmatpush3.bf16.xpose.msra.mxu1 %v735_v31 }
 0x2ad   : > { %v914_v32 = vpop.permute.xlu1 %913  ;;  %v715_v20 = vpop.permute.xlu0 %714 }
 0x2ae   : > { %3058 = vmatprep.subr.msk.bf16.mxu1 %vm718_vm1, %v715_v20  ;;  %3062 = vmatprep.subr.msk.bf16.mxu0 %vm718_vm1, %v914_v32  ;;  %v936_v33 = vsel %vm718_vm1, %v914_v32, 0  ;;  %v738_v35 = vsel %vm718_vm1, %v715_v20, 0 }
 0x2af   : > { %2889 = vmatpush3.bf16.xpose.msra.mxu0 %v936_v33 }
 0x2b1   : > { %v906_v34 = vpop.permute.xlu0 %905 }
 0x2b3   : > { %2873 = vmatpush3.bf16.xpose.msra.mxu1 %v738_v35 }
 0x2b5   : > { %v916_v36 = vpop.permute.xlu1 %915  ;;  %v908_v37 = vpop.permute.xlu0 %907 }
 0x2b6   : > { %3063 = vmatprep.subr.msk.bf16.mxu0 %vm718_vm1, %v916_v36  ;;  %v939_v40 = vsel %vm718_vm1, %v916_v36, 0 }
 0x2b7   : > { %2891 = vmatpush3.bf16.xpose.msra.mxu0 %v939_v40 }
 0x2b8   : > { %3064 = vmatprep.subr.msk.bf16.mxu0 %vm718_vm1, %v1285_v26 }
 0x2b9   : > { %v902_v41 = vpop.permute.xlu1 %901  ;;  %v1277_v28 = vpop.permute.xlu0 %1276 }
 0x2ba   : > { %2892 = vmatprep.mubr.msk.bf16.mxu0 %vm718_vm1, %v902_v41 }
 0x2bd   : > { %v904_v42 = vpop.permute.xlu1 %903  ;;  %v1279_v43 = vpop.permute.xlu0 %1278 }
 0x2be   : > { %2893 = vmatmul.mubr.msk.bf16.vlgmr.msra.gmra.mrb[0].mxu0 %vm718_vm1, %v904_v42 }
 0x2bf   : > { %2896 = vmatprep.mubr.msk.bf16.mxu0 %vm718_vm1, %v906_v34  ;;  %2933 = vmatpush3.bf16.xpose.msra.mxu0 %v1305_v44 }
 0x2c1   : > { %v1287_v45 = vpop.permute.xlu1 %1286  ;;  %v1575_v46 = vpop.permute.xlu0 %1574 }
 0x2c2   : > { %3065 = vmatprep.subr.msk.bf16.mxu0 %vm718_vm1, %v1287_v45  ;;  %v1308_v50 = vsel %vm718_vm1, %v1287_v45, 0  ;;  %v1597_v2 = vsel %vm718_vm1, %v1575_v46, 0 }
 0x2c5   : > { %v1289_v47 = vpop.permute.xlu1 %1288  ;;  %v1283_v21 = vpop.permute.xlu0 %1282 }
 0x2c6   : > { %2897 = vmatmul.mubr.msk.bf16.gmra.mrb[4].mxu0 %vm718_vm1, %v908_v37  ;;  %v1311_v55 = vsel %vm718_vm1, %v1289_v47, 0 }
 0x2c7   : > { %2935 = vmatpush3.bf16.xpose.msra.mxu0 %v1308_v50  ;;  %2940 = vmatprep.mubr.msk.bf16.mxu0 %vm718_vm1, %v1277_v28 }
 0x2c8   : > { %3066 = vmatprep.subr.msk.bf16.mxu0 %vm718_vm1, %v1289_v47 }
 0x2c9   : > { %v717_v29 = vpop.permute.xlu1 %716  ;;  %v1563_v51 = vpop.permute.xlu0 %1562 }
 0x2ca   : > { %v741_v52 = vsel %vm718_vm1, %v717_v29, 0  ;;  %3059 = vmatprep.subr.msk.bf16.mxu1 %vm718_vm1, %v717_v29 }
 0x2cb   : > { %2875 = vmatpush3.bf16.xpose.msra.mxu1 %v741_v52 }
 0x2cd   : > { %v1291_v53 = vpop.permute.xlu1 %1290  ;;  %v1567_v54 = vpop.permute.xlu0 %1566 }
 0x2ce   : > { %v1314_v38 = vsel %vm718_vm1, %v1291_v53, 0 }
 0x2cf   : > { %2937 = vmatpush3.bf16.xpose.msra.mxu0 %v1311_v55 }
 0x2d0   : > { %3067 = vmatprep.subr.msk.bf16.mxu0 %vm718_vm1, %v1291_v53 }
 0x2d1   : > { %v1571_v56 = vpop.permute.xlu1 %1570  ;;  %v1099_v57 = vpop.permute.xlu0 %1098 }
 0x2d2   : > { %2877 = vmatmul.mubr.msk.bf16.vlgmr.msra.gmra.mrb[16].mxu1 %vm718_vm1, %v3498_v4  ;;  %2900 = vmatprep.subr.bf16.mxu1 %v1099_v57  ;;  %v1591_v61 = vsel %vm718_vm1, %v1571_v56, 0 }
 0x2d3   : > { %2880 = vmatprep.mubr.msk.bf16.mxu1 %vm718_vm1, %v3508_v10  ;;  %2901 = vmatpush3.bf16.msra.mxu1 %v1099_v57 }
 0x2d5   : > { %v1573_v39 = vpop.permute.xlu1 %1572  ;;  %v1103_v63 = vpop.permute.xlu0 %1102 }
 0x2d6   : > { %v1594_v49 = vsel %vm718_vm1, %v1573_v39, 0 }
 0x2d7   : > { %2939 = vmatpush3.bf16.xpose.msra.mxu0 %v1314_v38 }
 0x2d8   : > { %3068 = vmatprep.subr.msk.bf16.mxu0 %vm718_vm1, %v1571_v56 }
 0x2d9   : > { %v1281_v58 = vpop.permute.xlu1 %1280  ;;  %v3600_v1 = vpop.permute.xlu0 %1191 }
 0x2da   : > { %2881 = vmatmul.mubr.msk.bf16.gmra.mrb[20].mxu1 %vm718_vm1, %v3517_v16 }
 0x2dd   : > { %v1577_v59 = vpop.permute.xlu1 %1576  ;;  %v1105_v3 = vpop.permute.xlu0 %1104 }
 0x2de   : > { %2941 = vmatmul.mubr.msk.bf16.vlgmr.msra.gmra.mrb[8].mxu0 %vm718_vm1, %v1279_v43  ;;  %v1600_v5 = vsel %vm718_vm1, %v1577_v59, 0 }
 0x2df   : > { %2944 = vmatprep.mubr.msk.bf16.mxu0 %vm718_vm1, %v1281_v58  ;;  %2965 = vmatpush3.bf16.xpose.msra.mxu0 %v1591_v61 }
 0x2e0   : > { %3069 = vmatprep.subr.msk.bf16.mxu0 %vm718_vm1, %v1573_v39 }
 0x2e1   : > { %v1565_v62 = vpop.permute.xlu1 %1564 }
 0x2e5   : > { %v1569_v0 = vpop.permute.xlu1 %1568 }
 0x2e6   : > { %2945 = vmatmul.mubr.msk.bf16.gmra.mrb[12].mxu0 %vm718_vm1, %v1283_v21 }
 0x2e7   : > { %2967 = vmatpush3.bf16.xpose.msra.mxu0 %v1594_v49  ;;  %2972 = vmatprep.mubr.msk.bf16.mxu0 %vm718_vm1, %v1563_v51 }
 0x2e8   : > { %3070 = vmatprep.subr.msk.bf16.mxu0 %vm718_vm1, %v1575_v46 }
 0x2e9   : > { %v1101_v60 = vpop.permute.xlu1 %1100 }
 0x2ea   : > { %2902 = vmatprep.subr.bf16.mxu1 %v1101_v60 }
 0x2eb   : > { %2903 = vmatpush3.bf16.msra.mxu1 %v1101_v60 }
 0x2ec   : > { %2904 = vmatprep.subr.bf16.mxu1 %v1103_v63 }
 0x2ed   : > { %v3604_v4 = vpop.permute.xlu1 %1187 }
 0x2ef   : > { %2905 = vmatpush3.bf16.msra.mxu1 %v1103_v63  ;;  %2969 = vmatpush3.bf16.xpose.msra.mxu0 %v1597_v2 }
 0x2f0   : > { %2906 = vmatprep.subr.bf16.mxu1 %v1105_v3  ;;  %3071 = vmatprep.subr.msk.bf16.mxu0 %vm718_vm1, %v1577_v59 }
 0x2f3   : > { %2907 = vmatpush3.bf16.msra.mxu1 %v1105_v3 }
 0x2f4   : > { %2916 = vmatprep.subr.bf16.mxu1 %v3604_v4 }
 0x2f7   : > { %2971 = vmatpush3.bf16.xpose.msra.mxu0 %v1600_v5 }
 0x2fe   : > { %2973 = vmatmul.mubr.msk.bf16.vlgmr.msra.gmra.mrb[16].mxu0 %vm718_vm1, %v1565_v62 }
 0x2ff   : > { %2976 = vmatprep.mubr.msk.bf16.mxu0 %vm718_vm1, %v1567_v54 }
 0x306   : > { %2977 = vmatmul.mubr.msk.bf16.gmra.mrb[20].mxu0 %vm718_vm1, %v1569_v0 }
 0x391   : > { %v3611_v7 = vpop.f32.mrb[0].mxu0 }
 0x392   : > { %v3613_v8 = vpop.f32.mrb[1].mxu0  ;;  %v1012_v9 = vsel %vm808_vm2, %v3611_v7, -inf }
 0x393   : > { %1013 = vmax.xlane.f32.xlu0 %v1012_v9  ;;  %v3617_v10 = vpop.f32.mrb[2].mxu0  ;;  %v1006_v27 = vsel %vm808_vm2, %v3613_v8, -inf }
 0x394   : > { %v3619_v11 = vpop.f32.mrb[3].mxu0  ;;  %v1015_v40 = vsel %vm808_vm2, %v3617_v10, -inf }
 0x395   : > { %v1009_v30 = vsel %vm808_vm2, %v3619_v11, -inf }
 0x399   : > { %v3621_v13 = vpop.f32.mrb[4].mxu0 }
 0x39a   : > { %v3623_v14 = vpop.f32.mrb[5].mxu0  ;;  %v1024_v43 = vsel %vm808_vm2, %v3621_v13, -inf }
 0x39b   : > { %v3625_v15 = vpop.f32.mrb[6].mxu0  ;;  %v1018_v51 = vsel %vm808_vm2, %v3623_v14, -inf }
 0x39c   : > { %v3627_v17 = vpop.f32.mrb[7].mxu0  ;;  %v1027_v42 = vsel %vm808_vm2, %v3625_v15, -inf }
 0x39d   : > { %v1021_v29 = vsel %vm808_vm2, %v3627_v17, -inf }
 0x3a5   : > { %v3629_v19 = vpop.f32.mrb[16].mxu1 }
 0x3a6   : > { %v3631_v22 = vpop.f32.mrb[17].mxu1  ;;  %v815_v23 = vsel %vm808_vm2, %v3629_v19, -inf }
 0x3a7   : > { %816 = vmax.xlane.f32.xlu0 %v815_v23  ;;  %v3635_v24 = vpop.f32.mrb[18].mxu1  ;;  %v809_v20 = vsel %vm808_vm2, %v3631_v22, -inf }
 0x3a8   : > { %v3637_v25 = vpop.f32.mrb[19].mxu1  ;;  %v818_v26 = vsel %vm808_vm2, %v3635_v24, -inf }
 0x3a9   : > { %819 = vmax.xlane.f32.xlu1 %v818_v26  ;;  %v812_v35 = vsel %vm808_vm2, %v3637_v25, -inf }
 0x3ab   : > { %1007 = vmax.xlane.f32.xlu0 %v1006_v27 }
 0x3ad   : > { %1010 = vmax.xlane.f32.xlu1 %v1009_v30  ;;  %v3645_v31 = vpop.f32.mrb[20].mxu1 }
 0x3ae   : > { %v3647_v32 = vpop.f32.mrb[21].mxu1  ;;  %v827_v47 = vsel %vm808_vm2, %v3645_v31, -inf }
 0x3af   : > { %810 = vmax.xlane.f32.xlu0 %v809_v20  ;;  %v3651_v33 = vpop.f32.mrb[22].mxu1  ;;  %v821_v53 = vsel %vm808_vm2, %v3647_v32, -inf }
 0x3b0   : > { %v3653_v34 = vpop.f32.mrb[23].mxu1  ;;  %v830_v44 = vsel %vm808_vm2, %v3651_v33, -inf }
 0x3b1   : > { %813 = vmax.xlane.f32.xlu1 %v812_v35  ;;  %v3657_v36 = vpop.f32.mrb[8].mxu0  ;;  %v824_v52 = vsel %vm808_vm2, %v3653_v34, -inf }
 0x3b2   : > { %v3659_v37 = vpop.f32.mrb[9].mxu0  ;;  %v1387_v55 = vsel %vm808_vm2, %v3657_v36, -inf }
 0x3b3   : > { %1016 = vmax.xlane.f32.xlu0 %v1015_v40  ;;  %v3663_v41 = vpop.f32.mrb[10].mxu0  ;;  %v1381_v57 = vsel %vm808_vm2, %v3659_v37, -inf }
 0x3b4   : > { %v3665_v28 = vpop.f32.mrb[11].mxu0  ;;  %v1390_v54 = vsel %vm808_vm2, %v3663_v41, -inf }
 0x3b5   : > { %1028 = vmax.xlane.f32.xlu1 %v1027_v42  ;;  %v1384_v56 = vsel %vm808_vm2, %v3665_v28, -inf }
 0x3b7   : > { %1025 = vmax.xlane.f32.xlu0 %v1024_v43 }
 0x3b9   : > { %831 = vmax.xlane.f32.xlu1 %v830_v44  ;;  %v3673_v45 = vpop.f32.mrb[12].mxu0 }
 0x3ba   : > { %v3675_v46 = vpop.f32.mrb[13].mxu0  ;;  %v1399_v38 = vsel %vm808_vm2, %v3673_v45, -inf }
 0x3bb   : > { %828 = vmax.xlane.f32.xlu0 %v827_v47  ;;  %v3679_v21 = vpop.f32.mrb[14].mxu0  ;;  %v1393_v62 = vsel %vm808_vm2, %v3675_v46, -inf }
 0x3bc   : > { %v3681_v50 = vpop.f32.mrb[15].mxu0  ;;  %v1402_v39 = vsel %vm808_vm2, %v3679_v21, -inf }
 0x3bd   : > { %1022 = vmax.xlane.f32.xlu1 %v1021_v29  ;;  %v1396_v58 = vsel %vm808_vm2, %v3681_v50, -inf  ;;  %v3744_v29 = vpop.permute.xlu1 %1189 }
 0x3bf   : > { %1019 = vmax.xlane.f32.xlu0 %v1018_v51 }
 0x3c1   : > { %825 = vmax.xlane.f32.xlu1 %v824_v52 }
 0x3c3   : > { %822 = vmax.xlane.f32.xlu0 %v821_v53 }
 0x3c5   : > { %1391 = vmax.xlane.f32.xlu1 %v1390_v54 }
 0x3c7   : > { %1388 = vmax.xlane.f32.xlu0 %v1387_v55 }
 0x3c9   : > { %1385 = vmax.xlane.f32.xlu1 %v1384_v56 }
 0x3cb   : > { %1382 = vmax.xlane.f32.xlu0 %v1381_v57 }
 0x3cd   : > { %1403 = vmax.xlane.f32.xlu1 %v1402_v39 }
 0x3cf   : > { %1400 = vmax.xlane.f32.xlu0 %v1399_v38 }
 0x3d1   : > { %1397 = vmax.xlane.f32.xlu1 %v1396_v58  ;;  %v3705_v59 = vpop.f32.mrb[16].mxu0 }
 0x3d2   : > { %v3707_v61 = vpop.f32.mrb[17].mxu0  ;;  %v1673_v60 = vsel %vm808_vm2, %v3705_v59, -inf }
 0x3d3   : > { %1394 = vmax.xlane.f32.xlu0 %v1393_v62  ;;  %v3711_v63 = vpop.f32.mrb[18].mxu0  ;;  %v1667_v9 = vsel %vm808_vm2, %v3707_v61, -inf }
 0x3d4   : > { %v3713_v0 = vpop.f32.mrb[19].mxu0  ;;  %v1676_v49 = vsel %vm808_vm2, %v3711_v63, -inf }
 0x3d5   : > { %1677 = vmax.xlane.f32.xlu1 %v1676_v49  ;;  %v1670_v2 = vsel %vm808_vm2, %v3713_v0, -inf }
 0x3d7   : > { %1674 = vmax.xlane.f32.xlu0 %v1673_v60 }
 0x3d9   : > { %1671 = vmax.xlane.f32.xlu1 %v1670_v2  ;;  %v3721_v3 = vpop.f32.mrb[20].mxu0 }
 0x3da   : > { %v3723_v5 = vpop.f32.mrb[21].mxu0  ;;  %v1685_v30 = vsel %vm808_vm2, %v3721_v3, -inf }
 0x3db   : > { %1668 = vmax.xlane.f32.xlu0 %v1667_v9  ;;  %v3727_v23 = vpop.f32.mrb[22].mxu0  ;;  %v1679_v35 = vsel %vm808_vm2, %v3723_v5, -inf }
 0x3dc   : > { %v3729_v26 = vpop.f32.mrb[23].mxu0  ;;  %v1688_v27 = vsel %vm808_vm2, %v3727_v23, -inf }
 0x3dd   : > { %1689 = vmax.xlane.f32.xlu1 %v1688_v27  ;;  %v1682_v20 = vsel %vm808_vm2, %v3729_v26, -inf }
 0x3df   : > { %1686 = vmax.xlane.f32.xlu0 %v1685_v30 }
 0x3e1   : > { %1683 = vmax.xlane.f32.xlu1 %v1682_v20 }
 0x3e3   : > { %1680 = vmax.xlane.f32.xlu0 %v1679_v35 }
 0x420   : > { %v1014_v40 = vpop.xlane.xlu0 %1013 }
 0x421   : > { %v1032_v42 = vsub.f32 %v3611_v7, %v1014_v40 }
 0x423   : > { %v1042_v43 = vmul.f32 1.442695, %v1032_v42 }
 0x425   : > { %3123 = vpow2.f32 %v1042_v43 }
 0x42f   : > { %v3740_v44 = vpop.eup %3123 }
 0x430   : > { %v1060_v47 = vsel %vm808_vm2, %v3740_v44, 0.0 }
 0x431   : > { %1061 = vadd.xlane.f32.xlu0 %v1060_v47 }
 0x434   : > { %v817_v51 = vpop.xlane.xlu0 %816 }
 0x435   : > { %v835_v52 = vsub.f32 %v3629_v19, %v817_v51 }
 0x436   : > { %v820_v53 = vpop.xlane.xlu1 %819 }
 0x437   : > { %v845_v54 = vmul.f32 1.442695, %v835_v52  ;;  %v836_v62 = vsub.f32 %v3635_v24, %v820_v53 }
 0x438   : > { %v1008_v55 = vpop.xlane.xlu0 %1007 }
 0x439   : > { %3125 = vpow2.f32 %v845_v54  ;;  %v1030_v56 = vsub.f32 %v3613_v8, %v1008_v55  ;;  %v847_v27 = vmul.f32 1.442695, %v836_v62 }
 0x43a   : > { %v1011_v7 = vpop.xlane.xlu1 %1010 }
 0x43b   : > { %v1038_v57 = vmul.f32 1.442695, %v1030_v56  ;;  %v1031_v8 = vsub.f32 %v3619_v11, %v1011_v7 }
 0x43c   : > { %v811_v39 = vpop.xlane.xlu0 %810 }
 0x43d   : > { %3127 = vpow2.f32 %v1038_v57  ;;  %v833_v38 = vsub.f32 %v3631_v22, %v811_v39 }
 0x43e   : > { %v814_v58 = vpop.xlane.xlu1 %813 }
 0x43f   : > { %v841_v49 = vmul.f32 1.442695, %v833_v38  ;;  %v834_v42 = vsub.f32 %v3637_v25, %v814_v58 }
 0x440   : > { %v1017_v60 = vpop.xlane.xlu0 %1016 }
 0x441   : > { %3129 = vpow2.f32 %v841_v49  ;;  %v1033_v19 = vsub.f32 %v3617_v10, %v1017_v60  ;;  %v1040_v10 = vmul.f32 1.442695, %v1031_v8 }
 0x442   : > { %v1029_v2 = vpop.xlane.xlu1 %1028 }
 0x443   : > { %v3751_v9 = vpop.eup %3125  ;;  %v1044_v30 = vmul.f32 1.442695, %v1033_v19  ;;  %v1037_v53 = vsub.f32 %v3625_v15, %v1029_v2 }
 0x444   : > { %v1026_v20 = vpop.xlane.xlu0 %1025  ;;  %v863_v35 = vsel %vm808_vm2, %v3751_v9, 0.0 }
 0x445   : > { %3131 = vpow2.f32 %v1044_v30  ;;  %v1036_v22 = vsub.f32 %v3621_v13, %v1026_v20  ;;  %864 = vadd.xlane.f32.xlu1 %v863_v35  ;;  %v843_v13 = vmul.f32 1.442695, %v834_v42  ;;  %v1052_v39 = vmul.f32 1.442695, %v1037_v53 }
 0x446   : > { %v832_v24 = vpop.xlane.xlu1 %831  ;;  %3133 = vpow2.f32 %v847_v27 }
 0x447   : > { %v3757_v40 = vpop.eup %3127  ;;  %v1050_v43 = vmul.f32 1.442695, %v1036_v22  ;;  %v840_v57 = vsub.f32 %v3651_v33, %v832_v24 }
 0x448   : > { %v829_v47 = vpop.xlane.xlu0 %828  ;;  %v1054_v11 = vsel %vm808_vm2, %v3757_v40, 0.0 }
 0x449   : > { %3135 = vpow2.f32 %v1050_v43  ;;  %v839_v51 = vsub.f32 %v3645_v31, %v829_v47  ;;  %1055 = vadd.xlane.f32.xlu0 %v1054_v11 }
 0x44a   : > { %3137 = vpow2.f32 %v1040_v10  ;;  %v1023_v55 = vpop.xlane.xlu1 %1022 }
 0x44b   : > { %v3763_v52 = vpop.eup %3129  ;;  %v853_v54 = vmul.f32 1.442695, %v839_v51  ;;  %v1035_v38 = vsub.f32 %v3627_v17, %v1023_v55 }
 0x44c   : > { %v1020_v56 = vpop.xlane.xlu0 %1019  ;;  %v857_v25 = vsel %vm808_vm2, %v3763_v52, 0.0 }
 0x44d   : > { %3139 = vpow2.f32 %v853_v54  ;;  %v1034_v7 = vsub.f32 %v3623_v14, %v1020_v56  ;;  %858 = vadd.xlane.f32.xlu1 %v857_v25  ;;  %v855_v14 = vmul.f32 1.442695, %v840_v57  ;;  %v1048_v33 = vmul.f32 1.442695, %v1035_v38 }
 0x44e   : > { %3141 = vpow2.f32 %v843_v13 }
 0x44f   : > { %v3770_v31 = vpop.eup %3131  ;;  %v1046_v58 = vmul.f32 1.442695, %v1034_v7  ;;  %v826_v7 = vpop.xlane.xlu1 %825 }
 0x450   : > { %v823_v15 = vpop.xlane.xlu0 %822  ;;  %v1063_v62 = vsel %vm808_vm2, %v3770_v31, 0.0  ;;  %v3775_v49 = vpop.eup %3133 }
 0x451   : > { %3143 = vpow2.f32 %v1046_v58  ;;  %v837_v60 = vsub.f32 %v3647_v32, %v823_v15  ;;  %1064 = vadd.xlane.f32.xlu1 %v1063_v62  ;;  %v866_v17 = vsel %vm808_vm2, %v3775_v49, 0.0  ;;  %v838_v58 = vsub.f32 %v3653_v34, %v826_v7 }
 0x452   : > { %3145 = vpow2.f32 %v1052_v39 }
 0x453   : > { %v3778_v19 = vpop.eup %3135  ;;  %v849_v2 = vmul.f32 1.442695, %v837_v60  ;;  %v1392_v39 = vpop.xlane.xlu1 %1391 }
 0x454   : > { %v1072_v27 = vsel %vm808_vm2, %v3778_v19, 0.0  ;;  %v3784_v8 = vpop.eup %3137  ;;  %v1389_v55 = vpop.xlane.xlu0 %1388 }
 0x455   : > { %3147 = vpow2.f32 %v849_v2  ;;  %867 = vadd.xlane.f32.xlu1 %v866_v17  ;;  %1073 = vadd.xlane.f32.xlu0 %v1072_v27  ;;  %v1057_v30 = vsel %vm808_vm2, %v3784_v8, 0.0  ;;  %v1407_v15 = vsub.f32 %v3657_v36, %v1389_v55 }
 0x456   : > { %3149 = vpow2.f32 %v855_v14  ;;  %v851_v14 = vmul.f32 1.442695, %v838_v58 }
 0x457   : > { %v3786_v32 = vpop.eup %3139  ;;  %3151 = vpow2.f32 %v1048_v33  ;;  %v1386_v62 = vpop.xlane.xlu1 %1385  ;;  %v1408_v33 = vsub.f32 %v3663_v41, %v1392_v39  ;;  %v1417_v2 = vmul.f32 1.442695, %v1407_v15 }
 0x458   : > { %v875_v20 = vsel %vm808_vm2, %v3786_v32, 0.0  ;;  %v3792_v35 = vpop.eup %3141  ;;  %v1383_v56 = vpop.xlane.xlu0 %1382  ;;  %3153 = vpow2.f32 %v851_v14 }
 0x459   : > { %1058 = vadd.xlane.f32.xlu1 %v1057_v30  ;;  %876 = vadd.xlane.f32.xlu0 %v875_v20  ;;  %v860_v24 = vsel %vm808_vm2, %v3792_v35, 0.0  ;;  %v1405_v17 = vsub.f32 %v3659_v37, %v1383_v56  ;;  %v1419_v27 = vmul.f32 1.442695, %v1408_v33  ;;  %v1406_v30 = vsub.f32 %v3665_v28, %v1386_v62 }
 0x45a   : > { %3155 = vpow2.f32 %v1417_v2 }
 0x45b   : > { %v3794_v22 = vpop.eup %3143  ;;  %3157 = vpow2.f32 %v1419_v27  ;;  %v1415_v36 = vmul.f32 1.442695, %v1406_v30 }
 0x45c   : > { %v1066_v10 = vsel %vm808_vm2, %v3794_v22, 0.0  ;;  %v3800_v42 = vpop.eup %3145  ;;  %v1401_v25 = vpop.xlane.xlu0 %1400 }
 0x45d   : > { %861 = vadd.xlane.f32.xlu1 %v860_v24  ;;  %1067 = vadd.xlane.f32.xlu0 %v1066_v10  ;;  %v1075_v11 = vsel %vm808_vm2, %v3800_v42, 0.0  ;;  %v1413_v24 = vmul.f32 1.442695, %v1405_v17  ;;  %v1411_v34 = vsub.f32 %v3673_v45, %v1401_v25 }
 0x45f   : > { %v3802_v43 = vpop.eup %3147  ;;  %3159 = vpow2.f32 %v1413_v24  ;;  %v1425_v41 = vmul.f32 1.442695, %v1411_v34 }
 0x460   : > { %v3804_v47 = vpop.eup %3149  ;;  %v869_v51 = vsel %vm808_vm2, %v3802_v43, 0.0  ;;  %v1395_v57 = vpop.xlane.xlu0 %1394  ;;  %3161 = vpow2.f32 %v1415_v36 }
 0x461   : > { %v3810_v13 = vpop.eup %3151  ;;  %1076 = vadd.xlane.f32.xlu1 %v1075_v11  ;;  %870 = vadd.xlane.f32.xlu0 %v869_v51  ;;  %v878_v54 = vsel %vm808_vm2, %v3804_v47, 0.0  ;;  %v1409_v37 = vsub.f32 %v3675_v46, %v1395_v57  ;;  %3163 = vpow2.f32 %v1425_v41 }
 0x462   : > { %v1069_v53 = vsel %vm808_vm2, %v3810_v13, 0.0  ;;  %v3832_v56 = vpop.eup %3153 }
 0x463   : > { %v872_v57 = vsel %vm808_vm2, %v3832_v56, 0.0 }
 0x464   : > { %v1675_v38 = vpop.xlane.xlu0 %1674  ;;  %v3834_v45 = vpop.eup %3155 }
 0x465   : > { %1070 = vadd.xlane.f32.xlu1 %v1069_v53  ;;  %879 = vadd.xlane.f32.xlu0 %v878_v54  ;;  %v1421_v54 = vmul.f32 1.442695, %v1409_v37  ;;  %v1693_v25 = vsub.f32 %v3705_v59, %v1675_v38  ;;  %v3837_v46 = vpop.eup %3157 }
 0x466   : > { %v1438_v38 = vsel %vm808_vm2, %v3837_v46, 0.0 }
 0x467   : > { %v1703_v58 = vmul.f32 1.442695, %v1693_v25 }
 0x468   : > { %v1669_v60 = vpop.xlane.xlu0 %1668 }
 0x469   : > { %v3843_v39 = vpop.eup %3159  ;;  %v1691_v15 = vsub.f32 %v3707_v61, %v1669_v60 }
 0x46a   : > { %v3846_v59 = vpop.eup %3161  ;;  %v1429_v62 = vsel %vm808_vm2, %v3843_v39, 0.0 }
 0x46b   : > { %v3852_v14 = vpop.eup %3163  ;;  %v1699_v2 = vmul.f32 1.442695, %v1691_v15  ;;  %v1432_v60 = vsel %vm808_vm2, %v3846_v59, 0.0 }
 0x46c   : > { %v3825_v20 = vpop.xlane.xlu0 %1686 }
 0x470   : > { %v1681_v51 = vpop.xlane.xlu0 %1680 }
 0x471   : > { %v1695_v55 = vsub.f32 %v3723_v5, %v1681_v51 }
 0x473   : > { %v1707_v7 = vmul.f32 1.442695, %v1695_v55 }
 0x476   : > { %1193 = vrot.lane.b32.xlu1 %v3517_v16, %s3308_s22  ;;  %v1404_v16 = vpop.xlane.xlu1 %1403 }
 0x477   : > { %v1412_v10 = vsub.f32 %v3679_v21, %v1404_v16  ;;  %v1447_v16 = vsel %vm808_vm2, %v3852_v14, 0.0 }
 0x479   : > { %v1427_v53 = vmul.f32 1.442695, %v1412_v10 }
 0x47a   : > { %v1398_v11 = vpop.xlane.xlu1 %1397 }
 0x47b   : > { %1763 = vrot.lane.b32.xlu0 %v3490_v48, %s3301_s15  ;;  %v1410_v28 = vsub.f32 %v3681_v50, %v1398_v11  ;;  %3165 = vpow2.f32 %v1427_v53  ;;  %v1435_v50 = vsel %vm808_vm2, %v3834_v45, 0.0  ;;  %v1697_v11 = vsub.f32 %v3721_v3, %v3825_v20 }
 0x47c   : > { %3167 = vpow2.f32 %v1421_v54 }
 0x47d   : > { %v1423_v21 = vmul.f32 1.442695, %v1410_v28  ;;  %v1711_v53 = vmul.f32 1.442695, %v1697_v11 }
 0x47e   : > { %v1678_v5 = vpop.xlane.xlu1 %1677 }
 0x47f   : > { %3169 = vpow2.f32 %v1423_v21  ;;  %v1694_v33 = vsub.f32 %v3711_v63, %v1678_v5 }
 0x480   : > { %3171 = vpow2.f32 %v1707_v7 }
 0x481   : > { %3173 = vpow2.f32 %v1703_v58  ;;  %v1705_v30 = vmul.f32 1.442695, %v1694_v33 }
 0x482   : > { %v1672_v61 = vpop.xlane.xlu1 %1671  ;;  %3175 = vpow2.f32 %v1699_v2 }
 0x483   : > { %v1692_v24 = vsub.f32 %v3713_v0, %v1672_v61  ;;  %3177 = vpow2.f32 %v1705_v30 }
 0x485   : > { %v3855_v17 = vpop.eup %3165  ;;  %v1701_v41 = vmul.f32 1.442695, %v1692_v24 }
 0x486   : > { %v3861_v27 = vpop.eup %3167  ;;  %v1450_v34 = vsel %vm808_vm2, %v3855_v17, 0.0 }
 0x487   : > { %v1441_v36 = vsel %vm808_vm2, %v3861_v27, 0.0  ;;  %3179 = vpow2.f32 %v1701_v41 }
 0x488   : > { %3181 = vpow2.f32 %v1711_v53 }
 0x489   : > { %v3864_v63 = vpop.eup %3169 }
 0x48a   : > { %v3870_v10 = vpop.eup %3171  ;;  %v1444_v0 = vsel %vm808_vm2, %v3864_v63, 0.0 }
 0x48b   : > { %v1727_v37 = vsel %vm808_vm2, %v3870_v10, 0.0  ;;  %v3878_v51 = vpop.eup %3173 }
 0x48c   : > { %v1721_v28 = vsel %vm808_vm2, %v3878_v51, 0.0  ;;  %v3882_v54 = vpop.eup %3175 }
 0x48d   : > { %v1715_v3 = vsel %vm808_vm2, %v3882_v54, 0.0  ;;  %v3886_v20 = vpop.eup %3177 }
 0x48e   : > { %v1724_v55 = vsel %vm808_vm2, %v3886_v20, 0.0 }
 0x491   : > { %v3890_v21 = vpop.eup %3179 }
 0x492   : > { %v1718_v25 = vsel %vm808_vm2, %v3890_v21, 0.0  ;;  %v3894_v7 = vpop.eup %3181 }
 0x49a   : > { %873 = vadd.xlane.f32.xlu1 %v872_v57  ;;  %1436 = vadd.xlane.f32.xlu0 %v1435_v50  ;;  %v1733_v57 = vsel %vm808_vm2, %v3894_v7, 0.0  ;;  %v1690_v50 = vpop.xlane.xlu1 %1689 }
 0x49e   : > { %1439 = vadd.xlane.f32.xlu0 %v1438_v38  ;;  %1430 = vadd.xlane.f32.xlu1 %v1429_v62  ;;  %v1684_v5 = vpop.xlane.xlu1 %1683  ;;  %v1698_v62 = vsub.f32 %v3727_v23, %v1690_v50 }
 0x4a0   : > { %v1713_v61 = vmul.f32 1.442695, %v1698_v62 }
 0x4a2   : > { %1433 = vadd.xlane.f32.xlu0 %v1432_v60  ;;  %1448 = vadd.xlane.f32.xlu1 %v1447_v16  ;;  %v1696_v60 = vsub.f32 %v3729_v26, %v1684_v5  ;;  %3183 = vpow2.f32 %v1713_v61 }
 0x4a4   : > { %v1709_v24 = vmul.f32 1.442695, %v1696_v60 }
 0x4a6   : > { %1451 = vadd.xlane.f32.xlu0 %v1450_v34  ;;  %1442 = vadd.xlane.f32.xlu1 %v1441_v36 }
 0x4aa   : > { %1445 = vadd.xlane.f32.xlu0 %v1444_v0  ;;  %1728 = vadd.xlane.f32.xlu1 %v1727_v37 }
 0x4ac   : > { %v3906_v11 = vpop.eup %3183 }
 0x4ae   : > { %1722 = vadd.xlane.f32.xlu0 %v1721_v28 }
 0x4b2   : > { %1716 = vadd.xlane.f32.xlu0 %v1715_v3 }
 0x4b6   : > { %1725 = vadd.xlane.f32.xlu0 %v1724_v55 }
 0x4ba   : > { %1719 = vadd.xlane.f32.xlu0 %v1718_v25  ;;  %v1736_v25 = vsel %vm808_vm2, %v3906_v11, 0.0 }
 0x4bb   : > { %1765 = vrot.lane.b32.xlu1 %v3500_v6, %s3301_s15 }
 0x4be   : > { %1734 = vadd.xlane.f32.xlu0 %v1733_v57  ;;  %v1062_v15 = vpop.xlane.xlu0 %1061 }
 0x4d2   : > { %v865_v58 = vpop.xlane.xlu1 %864 }
 0x4d4   : > { %1767 = vrot.lane.b32.xlu0 %v3510_v12, %s3301_s15 }
 0x4d6   : > { %v1056_v33 = vpop.xlane.xlu0 %1055 }
 0x4da   : > { %v859_v38 = vpop.xlane.xlu1 %858 }
 0x4de   : > { %v1065_v2 = vpop.xlane.xlu1 %1064 }
 0x4df   : > { %3185 = vrcp.f32 %v1065_v2 }
 0x4e0   : > { %3187 = vrcp.f32 %v1056_v33 }
 0x4e1   : > { %3189 = vrcp.f32 %v1062_v15 }
 0x4e2   : > { %v868_v16 = vpop.xlane.xlu1 %867  ;;  %v1074_v30 = vpop.xlane.xlu0 %1073 }
 0x4e6   : > { %v1059_v34 = vpop.xlane.xlu1 %1058  ;;  %v3904_v36 = vpop.xlane.xlu0 %876 }
 0x4e7   : > { %3191 = vrcp.f32 %v1059_v34 }
 0x4e8   : > { %3193 = vpow2.f32 %v1709_v24 }
 0x4e9   : > { %v3186_v23 = vpop.eup %3185  ;;  %3195 = vrcp.f32 %v859_v38 }
 0x4ea   : > { %v862_v41 = vpop.xlane.xlu1 %861  ;;  %v1068_v0 = vpop.xlane.xlu0 %1067  ;;  %v1089_v3 = vmul.f32 %v3186_v23, %v3770_v31 }
 0x4eb   : > { %v3188_v26 = vpop.eup %3187  ;;  %3197 = vrcp.f32 %v862_v41 }
 0x4ec   : > { %v3190_v53 = vpop.eup %3189  ;;  %v1086_v57 = vmul.f32 %v3188_v26, %v3757_v40 }
 0x4ed   : > { %v1088_v15 = vmul.f32 %v3190_v53, %v3740_v44 }
 0x4ee   : > { %v1077_v37 = vpop.xlane.xlu1 %1076 }
 0x4ef   : > { %3199 = vrcp.f32 %v1077_v37  ;;  %v1095_v62 = vpack.c.bf16 %v1089_v3, %v1088_v15 }
 0x4f0   : > { %3201 = vrcp.f32 %v1068_v0 }
 0x4f1   : > { %v3192_v28 = vpop.eup %3191  ;;  %3203 = vrcp.f32 %v1074_v30 }
 0x4f2   : > { %v1071_v55 = vpop.xlane.xlu1 %1070  ;;  %v1087_v50 = vmul.f32 %v3192_v28, %v3784_v8  ;;  %v3913_v5 = vpop.eup %3193 }
 0x4f3   : > { %3205 = vrcp.f32 %v1071_v55  ;;  %1737 = vadd.xlane.f32.xlu0 %v1736_v25  ;;  %v1730_v31 = vsel %vm808_vm2, %v3913_v5, 0.0  ;;  %v3196_v33 = vpop.eup %3195 }
 0x4f4   : > { %v1094_v38 = vpack.c.bf16 %v1087_v50, %v1086_v57  ;;  %3207 = vrcp.f32 %v868_v16  ;;  %v889_v41 = vmul.f32 %v3196_v33, %v3763_v52  ;;  %v871_v52 = vpop.xlane.xlu0 %870 }
 0x4f5   : > { %v3198_v40 = vpop.eup %3197  ;;  %3209 = vrcp.f32 %v865_v58 }
 0x4f6   : > { %2908 = vmatprep.mubr.msk.bf16.mxu1 %vm808_vm2, %v1094_v38  ;;  %v1194_v34 = vpop.permute.xlu1 %1193 }
 0x4f7   : > { %1731 = vadd.xlane.f32.xlu0 %v1730_v31  ;;  %2909 = vmatmul.mubr.msk.bf16.vlgmr.msra.gmra.mrb[24].mxu1 %vm808_vm2, %v1095_v62 }
 0x4f8   : > { %2917 = vmatpush3.bf16.msra.mxu1 %v3604_v4  ;;  %v890_v4 = vmul.f32 %v3198_v40, %v3792_v35 }
 0x4f9   : > { %2918 = vmatprep.subr.bf16.mxu1 %v3744_v29  ;;  %v3200_v44 = vpop.eup %3199 }
 0x4fa   : > { %v3202_v8 = vpop.eup %3201  ;;  %v1093_v60 = vmul.f32 %v3200_v44, %v3800_v42  ;;  %v897_v42 = vpack.c.bf16 %v890_v4, %v889_v41 }
 0x4fb   : > { %v3204_v2 = vpop.eup %3203  ;;  %v1090_v30 = vmul.f32 %v3202_v8, %v3794_v22 }
 0x4fc   : > { %2919 = vmatpush3.bf16.msra.mxu1 %v3744_v29  ;;  %v1092_v24 = vmul.f32 %v3204_v2, %v3778_v19 }
 0x4fd   : > { %v3206_v61 = vpop.eup %3205  ;;  %2920 = vmatprep.subr.bf16.mxu1 %v3600_v1 }
 0x4fe   : > { %v1091_v16 = vmul.f32 %v3206_v61, %v3810_v13  ;;  %v1097_v29 = vpack.c.bf16 %v1093_v60, %v1092_v24  ;;  %v3208_v23 = vpop.eup %3207 }
 0x4ff   : > { %v3210_v22 = vpop.eup %3209  ;;  %v892_v19 = vmul.f32 %v3208_v23, %v3775_v49  ;;  %v880_v49 = vpop.xlane.xlu0 %879 }
 0x500   : > { %2921 = vmatpush3.bf16.msra.mxu1 %v3600_v1  ;;  %v1096_v58 = vpack.c.bf16 %v1091_v16, %v1090_v30  ;;  %v891_v1 = vmul.f32 %v3210_v22, %v3751_v9  ;;  %3211 = vrcp.f32 %v880_v49 }
 0x501   : > { %2922 = vmatprep.subr.bf16.mxu1 %v1194_v34  ;;  %3213 = vrcp.f32 %v871_v52 }
 0x502   : > { %2912 = vmatprep.mubr.msk.bf16.mxu1 %vm808_vm2, %v1096_v58  ;;  %v898_v35 = vpack.c.bf16 %v892_v19, %v891_v1  ;;  %3215 = vrcp.f32 %v3904_v36 }
 0x503   : > { %2913 = vmatmul.mubr.msk.bf16.gmra.mrb[28].mxu1 %vm808_vm2, %v1097_v29  ;;  %v1764_v9 = vpop.permute.xlu0 %1763 }
 0x504   : > { %2923 = vmatpush3.bf16.msra.mxu1 %v1194_v34  ;;  %2924 = vmatprep.mubr.msk.bf16.mxu1 %vm808_vm2, %v897_v42 }
 0x505   : > { %2948 = vmatprep.subr.bf16.mxu1 %v3490_v48 }
 0x50a   : > { %v3212_v37 = vpop.eup %3211 }
 0x50b   : > { %2925 = vmatmul.mubr.msk.bf16.vlgmr.msra.gmra.mrb[24].mxu1 %vm808_vm2, %v898_v35  ;;  %v3214_v53 = vpop.eup %3213  ;;  %v896_v3 = vmul.f32 %v3212_v37, %v3804_v47 }
 0x50c   : > { %2949 = vmatpush3.bf16.msra.mxu1 %v3490_v48  ;;  %v3216_v28 = vpop.eup %3215  ;;  %v893_v36 = vmul.f32 %v3214_v53, %v3802_v43 }
 0x50d   : > { %2950 = vmatprep.subr.bf16.mxu1 %v3500_v6  ;;  %1769 = vrot.lane.b32.xlu0 %v3519_v18, %s3301_s15  ;;  %v895_v50 = vmul.f32 %v3216_v28, %v3786_v32 }
 0x50f   : > { %v900_v38 = vpack.c.bf16 %v896_v3, %v895_v50 }
 0x510   : > { %2951 = vmatpush3.bf16.msra.mxu1 %v3500_v6 }
 0x511   : > { %2952 = vmatprep.subr.bf16.mxu1 %v3510_v12 }
 0x514   : > { %2953 = vmatpush3.bf16.msra.mxu1 %v3510_v12 }
 0x515   : > { %2954 = vmatprep.subr.bf16.mxu1 %v3519_v18 }
 0x518   : > { %2955 = vmatpush3.bf16.msra.mxu1 %v3519_v18 }
 0x519   : > { %2980 = vmatprep.subr.bf16.mxu1 %v1764_v9 }
 0x527   : > { %v874_v48 = vpop.xlane.xlu1 %873  ;;  %v1437_v13 = vpop.xlane.xlu0 %1436 }
 0x528   : > { %3217 = vrcp.f32 %v874_v48 }
 0x52b   : > { %v1431_v0 = vpop.xlane.xlu1 %1430  ;;  %v1440_v6 = vpop.xlane.xlu0 %1439 }
 0x52c   : > { %3219 = vrcp.f32 %v1440_v6 }
 0x52d   : > { %3221 = vrcp.f32 %v1431_v0 }
 0x52e   : > { %3223 = vrcp.f32 %v1437_v13 }
 0x52f   : > { %v1449_v26 = vpop.xlane.xlu1 %1448  ;;  %v1434_v12 = vpop.xlane.xlu0 %1433 }
 0x530   : > { %3225 = vrcp.f32 %v1434_v12 }
 0x532   : > { %v3218_v18 = vpop.eup %3217 }
 0x533   : > { %v1452_v55 = vpop.xlane.xlu0 %1451  ;;  %v894_v25 = vmul.f32 %v3218_v18, %v3832_v56  ;;  %v1443_v57 = vpop.xlane.xlu1 %1442 }
 0x534   : > { %3227 = vrcp.f32 %v1452_v55  ;;  %v2763_v55 = vld [vmem:[%s4659_s4] ss:$0 sm:$0xff] }
 0x535   : > { %v899_v15 = vpack.c.bf16 %v894_v25, %v893_v36  ;;  %3229 = vrcp.f32 %v1443_v57  ;;  %v3283_v36 = vld [vmem:[%s3396_s14 + $0x10] sm:$0xff] }
 0x536   : > { %v3220_v31 = vpop.eup %3219  ;;  %3231 = vrcp.f32 %v1449_v26 }
 0x537   : > { %2928 = vmatprep.mubr.msk.bf16.mxu1 %vm808_vm2, %v899_v15  ;;  %v1446_v62 = vpop.xlane.xlu0 %1445  ;;  %v3222_v47 = vpop.eup %3221  ;;  %v1464_v56 = vmul.f32 %v3220_v31, %v3837_v46  ;;  %v3285_v15 = vld [vmem:[%s3396_s14 + $0x8] sm:$0xff]  ;;  %v3286_v31 = vld [vmem:[%s3396_s14 + $0x18] sm:$0xff] }
 0x538   : > { %2929 = vmatmul.mubr.msk.bf16.gmra.mrb[28].mxu1 %vm808_vm2, %v900_v38  ;;  %3233 = vrcp.f32 %v1446_v62  ;;  %v3224_v33 = vpop.eup %3223  ;;  %v1729_v44 = vpop.xlane.xlu1 %1728  ;;  %v1461_v32 = vmul.f32 %v3222_v47, %v3843_v39 }
 0x539   : > { %v1463_v2 = vmul.f32 %v3224_v33, %v3834_v45 }
 0x53a   : > { %v3226_v43 = vpop.eup %3225 }
 0x53b   : > { %v1723_v40 = vpop.xlane.xlu0 %1722  ;;  %v1462_v8 = vmul.f32 %v3226_v43, %v3846_v59  ;;  %v1474_v60 = vpack.c.bf16 %v1464_v56, %v1463_v2 }
 0x53c   : > { %v1766_v34 = vpop.permute.xlu1 %1765 }
 0x53d   : > { %v1473_v61 = vpack.c.bf16 %v1462_v8, %v1461_v32 }
 0x53e   : > { %v3228_v16 = vpop.eup %3227 }
 0x53f   : > { %v1717_v30 = vpop.xlane.xlu0 %1716  ;;  %2956 = vmatprep.mubr.msk.bf16.mxu1 %vm808_vm2, %v1473_v61  ;;  %v3230_v4 = vpop.eup %3229  ;;  %v1468_v39 = vmul.f32 %v3228_v16, %v3855_v17  ;;  %v3288_v61 = vld [vmem:[%s3396_s14 + $0x20] sm:$0xff] }
 0x540   : > { %2957 = vmatmul.mubr.msk.bf16.vlgmr.msra.gmra.mrb[24].mxu1 %vm808_vm2, %v1474_v60  ;;  %v3232_v24 = vpop.eup %3231  ;;  %v1465_v59 = vmul.f32 %v3230_v4, %v3861_v27  ;;  %3235 = vrcp.f32 %v1717_v30 }
 0x541   : > { %2981 = vmatpush3.bf16.msra.mxu1 %v1764_v9  ;;  %v1467_v41 = vmul.f32 %v3232_v24, %v3852_v14 }
 0x542   : > { %v3234_v46 = vpop.eup %3233  ;;  %2982 = vmatprep.subr.bf16.mxu1 %v1766_v34 }
 0x543   : > { %v1726_v58 = vpop.xlane.xlu0 %1725  ;;  %v1466_v45 = vmul.f32 %v3234_v46, %v3864_v63  ;;  %v1476_v42 = vpack.c.bf16 %v1468_v39, %v1467_v41 }
 0x545   : > { %2983 = vmatpush3.bf16.msra.mxu1 %v1766_v34  ;;  %v1475_v29 = vpack.c.bf16 %v1466_v45, %v1465_v59  ;;  %v3290_v45 = vld [vmem:[%s3396_s14 + $0x38] sm:$0xff] }
 0x547   : > { %v1720_v23 = vpop.xlane.xlu0 %1719  ;;  %2960 = vmatprep.mubr.msk.bf16.mxu1 %vm808_vm2, %v1475_v29 }
 0x548   : > { %3237 = vrcp.f32 %v1720_v23  ;;  %2961 = vmatmul.mubr.msk.bf16.gmra.mrb[28].mxu1 %vm808_vm2, %v1476_v42 }
 0x549   : > { %3239 = vrcp.f32 %v1726_v58  ;;  %v3289_v58 = vld [vmem:[%s3396_s14 + $0x28] sm:$0xff] }
 0x54a   : > { %v3236_v1 = vpop.eup %3235  ;;  %3241 = vrcp.f32 %v1723_v40 }
 0x54b   : > { %v1735_v22 = vpop.xlane.xlu0 %1734  ;;  %v1747_v27 = vmul.f32 %v3236_v1, %v3882_v54 }
 0x54f   : > { %v1768_v19 = vpop.permute.xlu0 %1767 }
 0x550   : > { %2984 = vmatprep.subr.bf16.mxu1 %v1768_v19 }
 0x551   : > { %2985 = vmatpush3.bf16.msra.mxu1 %v1768_v19 }
 0x552   : > { %v3238_v17 = vpop.eup %3237 }
 0x553   : > { %v1748_v14 = vmul.f32 %v3238_v17, %v3890_v21  ;;  %v3240_v52 = vpop.eup %3239 }
 0x554   : > { %v3242_v9 = vpop.eup %3241  ;;  %v1750_v48 = vmul.f32 %v3240_v52, %v3886_v20 }
 0x555   : > { %v1755_v63 = vpack.c.bf16 %v1748_v14, %v1747_v27  ;;  %v1749_v54 = vmul.f32 %v3242_v9, %v3878_v51 }
 0x557   : > { %2988 = vmatprep.mubr.msk.bf16.mxu1 %vm808_vm2, %v1755_v63  ;;  %v1756_v21 = vpack.c.bf16 %v1750_v48, %v1749_v54 }
 0x580   : > { %v1738_v35 = vpop.xlane.xlu0 %1737 }
 0x581   : > { %3243 = vrcp.f32 %v1738_v35 }
 0x582   : > { %3245 = vrcp.f32 %v1729_v44  ;;  %v3287_v44 = vld [vmem:[%s3396_s14 + $0x30] sm:$0xff] }
 0x583   : > { %3247 = vrcp.f32 %v1735_v22 }
 0x584   : > { %v1732_v49 = vpop.xlane.xlu0 %1731 }
 0x585   : > { %3249 = vrcp.f32 %v1732_v49 }
 0x588   : > { %v1770_v13 = vpop.permute.xlu0 %1769 }
 0x589   : > { %2986 = vmatprep.subr.bf16.mxu1 %v1770_v13 }
 0x58a   : > { %2987 = vmatpush3.bf16.msra.mxu1 %v1770_v13 }
 0x58b   : > { %v3244_v0 = vpop.eup %3243 }
 0x58c   : > { %v3246_v6 = vpop.eup %3245  ;;  %v1754_v12 = vmul.f32 %v3244_v0, %v3906_v11 }
 0x58d   : > { %2989 = vmatmul.mubr.msk.bf16.vlgmr.msra.gmra.mrb[24].mxu1 %vm808_vm2, %v1756_v21  ;;  %v3248_v37 = vpop.eup %3247  ;;  %v1751_v53 = vmul.f32 %v3246_v6, %v3870_v10 }
 0x58e   : > { %v1753_v51 = vmul.f32 %v3248_v37, %v3894_v7 }
 0x58f   : > { %v3250_v26 = vpop.eup %3249 }
 0x590   : > { %v1752_v20 = vmul.f32 %v3250_v26, %v3913_v5  ;;  %v1758_v18 = vpack.c.bf16 %v1754_v12, %v1753_v51  ;;  %v3284_v5 = vld [vmem:[%s3396_s14] sm:$0xff] }
 0x592   : > { %v1757_v28 = vpack.c.bf16 %v1752_v20, %v1751_v53 }
 0x594   : > { %2992 = vmatprep.mubr.msk.bf16.mxu1 %vm808_vm2, %v1757_v28 }
 0x595   : > { %2993 = vmatmul.mubr.msk.bf16.gmra.mrb[28].mxu1 %vm808_vm2, %v1758_v18 }
 0x660   : > { %v2990_v3 = vpop.f32.mrb[24].mxu1 }
 0x661   : > { %v1821_v11 = vpop.f32.mrb[25].mxu1  ;;  %v1862_v10 = vadd.f32 %v3283_v36, %v2990_v3 }
 0x662   : > { %v1860_v25 = vadd.f32 %v3284_v5, %v1821_v11  ;;  %v2991_v57 = vpop.f32.mrb[26].mxu1 }
 0x663   : > { %v1824_v7 = vpop.f32.mrb[27].mxu1  ;;  %v3986_v62 = vadd.f32 %v2763_v55, %v1862_v10  ;;  %v1863_v47 = vadd.f32 %v3286_v31, %v2991_v57 }
 0x664   : > { %v3983_v50 = vadd.f32 %v2763_v55, %v1860_v25  ;;  %v1861_v38 = vadd.f32 %v3285_v15, %v1824_v7 }
 0x665   : > { %4688 = vst [vmem:[#allocation3_spill] sm:$0xff] %v3986_v62  ;;  %v3996_v2 = vadd.f32 %v2763_v55, %v1863_v47  ;;  %v1891_v16 = vsel %vm4683_vm0, %v3986_v62, 0.0 }
 0x666   : > { %4687 = vst [vmem:[#allocation2_spill] sm:$0xff] %v3983_v50  ;;  %v3989_v33 = vadd.f32 %v2763_v55, %v1861_v38  ;;  %v1885_v43 = vsel %vm4683_vm0, %v3983_v50, 0.0 }
 0x667   : > { %1886 = vadd.xlane.f32.xlu0 %v1885_v43  ;;  %4690 = vst [vmem:[#allocation5_spill] sm:$0xff] %v3996_v2  ;;  %v1894_v59 = vsel %vm4683_vm0, %v3996_v2, 0.0 }
 0x668   : > { %4689 = vst [vmem:[#allocation4_spill] sm:$0xff] %v3989_v33  ;;  %v2994_v56 = vpop.f32.mrb[28].mxu1  ;;  %v1888_v40 = vsel %vm4683_vm0, %v3989_v33, 0.0 }
 0x669   : > { %v1866_v32 = vadd.f32 %v3287_v44, %v2994_v56  ;;  %1889 = vadd.xlane.f32.xlu1 %v1888_v40  ;;  %v1837_v8 = vpop.f32.mrb[29].mxu1 }
 0x66a   : > { %v1864_v60 = vadd.f32 %v3288_v61, %v1837_v8  ;;  %v2995_v30 = vpop.f32.mrb[30].mxu1  ;;  %v3098_v8 = vld [vmem:[%s4662_s7 + $0x8] sm:$0xff]  }
 0x66b   : > { %v4001_v4 = vadd.f32 %v2763_v55, %v1866_v32  ;;  %1892 = vadd.xlane.f32.xlu0 %v1891_v16  ;;  %v1840_v24 = vpop.f32.mrb[31].mxu1  ;;  %v1867_v41 = vadd.f32 %v3290_v45, %v2995_v30  ;;  %v3097_v32 = vld [vmem:[%s4662_s7] sm:$0xff]  }
 0x66c   : > { %v4005_v46 = vadd.f32 %v2763_v55, %v1864_v60  ;;  %v1865_v39 = vadd.f32 %v3289_v58, %v1840_v24  ;;  %2996 = vmatprep.subr.bf16.mxu1 %v3097_v32 }
 0x66d   : > { %4691 = vst [vmem:[#allocation6_spill] sm:$0xff] %v4001_v4  ;;  %v1903_v34 = vsel %vm4683_vm0, %v4001_v4, 0.0  ;;  %v4015_v42 = vadd.f32 %v2763_v55, %v1867_v41  ;;  %2997 = vmatpush3.bf16.msra.mxu1 %v3097_v32 }
 0x66e   : > { %4692 = vst [vmem:[#allocation7_spill] sm:$0xff] %v4005_v46  ;;  %1904 = vadd.xlane.f32.xlu1 %v1903_v34  ;;  %v4011_v29 = vadd.f32 %v2763_v55, %v1865_v39  ;;  %v1897_v23 = vsel %vm4683_vm0, %v4005_v46, 0.0  ;;  %2998 = vmatprep.subr.bf16.mxu1 %v3098_v8 }
 0x66f   : > { %1895 = vadd.xlane.f32.xlu0 %v1894_v59  ;;  %4694 = vst [vmem:[#allocation9_spill] sm:$0xff] %v4015_v42  ;;  %v1906_v19 = vsel %vm4683_vm0, %v4015_v42, 0.0 }
 0x670   : > { %4693 = vst [vmem:[#allocation8_spill] sm:$0xff] %v4011_v29  ;;  %v1900_v22 = vsel %vm4683_vm0, %v4011_v29, 0.0 }
 0x671   : > { %2999 = vmatpush3.bf16.msra.mxu1 %v3098_v8 }
 0x673   : > { %1898 = vadd.xlane.f32.xlu0 %v1897_v23 }
 0x677   : > { %1901 = vadd.xlane.f32.xlu0 %v1900_v22 }
 0x67b   : > { %1907 = vadd.xlane.f32.xlu0 %v1906_v19 }
 0x6f4   : > { %v1887_v1 = vpop.xlane.xlu0 %1886 }
 0x6f5   : > { %v1909_v17 = vmul.f32 0.03125, %v1887_v1 }
 0x6f6   : > { %v1890_v27 = vpop.xlane.xlu1 %1889 }
 0x6f7   : > { %v4022_v14 = vsub.f32 %v3983_v50, %v1909_v17  ;;  %v1910_v63 = vmul.f32 0.03125, %v1890_v27  ;;  %v2764_v17 = vld [vmem:[%s4660_s5] ss:$0 sm:$0xff] }
 0x6f8   : > { %v1893_v35 = vpop.xlane.xlu0 %1892 }
 0x6f9   : > { %v4025_v52 = vsub.f32 %v3989_v33, %v1910_v63  ;;  %v1911_v49 = vmul.f32 0.03125, %v1893_v35  ;;  %v1925_v9 = vmul.f32 %v4022_v14, %v4022_v14 }
 0x6fb   : > { %v4030_v48 = vsub.f32 %v3986_v62, %v1911_v49  ;;  %v1933_v13 = vsel %vm4683_vm0, %v1925_v9, 0.0  ;;  %v1926_v54 = vmul.f32 %v4025_v52, %v4025_v52  ;;  %v1905_v21 = vpop.xlane.xlu1 %1904 }
 0x6fc   : > { %v1896_v0 = vpop.xlane.xlu0 %1895  ;;  %1934 = vadd.xlane.f32.xlu1 %v1933_v13  ;;  %v1915_v12 = vmul.f32 0.03125, %v1905_v21 }
 0x6fd   : > { %v1912_v6 = vmul.f32 0.03125, %v1896_v0  ;;  %v1936_v37 = vsel %vm4683_vm0, %v1926_v54, 0.0  ;;  %v1927_v26 = vmul.f32 %v4030_v48, %v4030_v48 }
 0x6fe   : > { %1937 = vadd.xlane.f32.xlu0 %v1936_v37  ;;  %v4045_v3 = vsub.f32 %v4001_v4, %v1915_v12  ;;  %v2765_v37 = vld [vmem:[%s4661_s6] ss:$0 sm:$0xff] }
 0x6ff   : > { %v4039_v53 = vsub.f32 %v3996_v2, %v1912_v6  ;;  %v1939_v20 = vsel %vm4683_vm0, %v1927_v26, 0.0 }
 0x700   : > { %1940 = vadd.xlane.f32.xlu1 %v1939_v20  ;;  %v1899_v51 = vpop.xlane.xlu0 %1898  ;;  %v1931_v7 = vmul.f32 %v4045_v3, %v4045_v3 }
 0x701   : > { %v1913_v28 = vmul.f32 0.03125, %v1899_v51  ;;  %v1928_v18 = vmul.f32 %v4039_v53, %v4039_v53 }
 0x702   : > { %v1951_v43 = vsel %vm4683_vm0, %v1931_v7, 0.0 }
 0x703   : > { %v4048_v55 = vsub.f32 %v4005_v46, %v1913_v28  ;;  %v1942_v11 = vsel %vm4683_vm0, %v1928_v18, 0.0 }
 0x704   : > { %1943 = vadd.xlane.f32.xlu0 %v1942_v11  ;;  %v1902_v36 = vpop.xlane.xlu0 %1901 }
 0x705   : > { %v1914_v10 = vmul.f32 0.03125, %v1902_v36  ;;  %v1929_v5 = vmul.f32 %v4048_v55, %v4048_v55 }
 0x707   : > { %v4054_v25 = vsub.f32 %v4011_v29, %v1914_v10  ;;  %v1945_v57 = vsel %vm4683_vm0, %v1929_v5, 0.0 }
 0x708   : > { %1946 = vadd.xlane.f32.xlu1 %v1945_v57  ;;  %v1908_v15 = vpop.xlane.xlu0 %1907 }
 0x709   : > { %v1916_v38 = vmul.f32 0.03125, %v1908_v15  ;;  %v1930_v31 = vmul.f32 %v4054_v25, %v4054_v25 }
 0x70b   : > { %v4062_v47 = vsub.f32 %v4015_v42, %v1916_v38  ;;  %v1948_v56 = vsel %vm4683_vm0, %v1930_v31, 0.0 }
 0x70c   : > { %1952 = vadd.xlane.f32.xlu1 %v1951_v43  ;;  %1949 = vadd.xlane.f32.xlu0 %v1948_v56 }
 0x70d   : > { %v1932_v40 = vmul.f32 %v4062_v47, %v4062_v47 }
 0x70f   : > { %v1954_v44 = vsel %vm4683_vm0, %v1932_v40, 0.0 }
 0x710   : > { %1955 = vadd.xlane.f32.xlu0 %v1954_v44 }
 0x789   : > { %v1935_v61 = vpop.xlane.xlu1 %1934 }
 0x78a   : > { %v1957_v60 = vmul.f32 0.03125, %v1935_v61 }
 0x78b   : > { %v1938_v30 = vpop.xlane.xlu0 %1937 }
 0x78c   : > { %v1965_v16 = vadd.f32 1e-05, %v1957_v60  ;;  %v1958_v24 = vmul.f32 0.03125, %v1938_v30 }
 0x78d   : > { %v1941_v34 = vpop.xlane.xlu1 %1940 }
 0x78e   : > { %3251 = vrsqrt.f32 %v1965_v16  ;;  %v1966_v58 = vadd.f32 1e-05, %v1958_v24  ;;  %v1959_v39 = vmul.f32 0.03125, %v1941_v34 }
 0x790   : > { %3253 = vrsqrt.f32 %v1966_v58  ;;  %v1967_v59 = vadd.f32 1e-05, %v1959_v39 }
 0x791   : > { %v1944_v45 = vpop.xlane.xlu0 %1943 }
 0x792   : > { %3255 = vrsqrt.f32 %v1967_v59  ;;  %v1960_v41 = vmul.f32 0.03125, %v1944_v45  ;;  %v3102_v45 = vld [vmem:[%s4666_s11 + $0x18] sm:$0xff]  }
 0x794   : > { %v1968_v23 = vadd.f32 1e-05, %v1960_v41  ;;  %v3103_v41 = vld [vmem:[%s4666_s11 + $0x20] sm:$0xff]  }
 0x795   : > { %v1947_v22 = vpop.xlane.xlu1 %1946 }
 0x796   : > { %3257 = vrsqrt.f32 %v1968_v23  ;;  %v1961_v19 = vmul.f32 0.03125, %v1947_v22  ;;  %v3104_v23 = vld [vmem:[%s4666_s11 + $0x28] sm:$0xff]   ;;  %v3105_v22 = vld [vmem:[%s4666_s11 + $0x30] sm:$0xff]  }
 0x798   : > { %v3252_v1 = vpop.eup %3251  ;;  %v1969_v27 = vadd.f32 1e-05, %v1961_v19  ;;  %v3106_v19 = vld [vmem:[%s4666_s11 + $0x38] sm:$0xff]  }
 0x799   : > { %v1981_v63 = vmul.f32 %v3252_v1, %v4022_v14  ;;  %v1953_v35 = vpop.xlane.xlu1 %1952  ;;  %v1950_v49 = vpop.xlane.xlu0 %1949  ;;  %v2121_v1 = vlaneseq }
 0x79a   : > { %v3254_v9 = vpop.eup %3253  ;;  %3259 = vrsqrt.f32 %v1969_v27  ;;  %v1963_v13 = vmul.f32 0.03125, %v1953_v35  ;;  %v1962_v54 = vmul.f32 0.03125, %v1950_v49  ;;  %v3309_v35 = vmov 0.0  }
 0x79b   : > { %v1982_v21 = vmul.f32 %v3254_v9, %v4025_v52  ;;  %v1995_v0 = vmul.f32 %v2764_v17, %v1981_v63  ;;  %v4121_v49 = vrot.slane %v3309_v35, 7 }
 0x79c   : > { %v3256_v6 = vpop.eup %3255  ;;  %v1971_v26 = vadd.f32 1e-05, %v1963_v13  ;;  %v1970_v12 = vadd.f32 1e-05, %v1962_v54  ;;  %v2154_v54 = vld [vmem:[%s4664_s9] sm:$0xff] }
 0x79d   : > { %v1983_v20 = vmul.f32 %v3256_v6, %v4030_v48  ;;  %v1956_v51 = vpop.xlane.xlu0 %1955  ;;  %v1996_v14 = vmul.f32 %v2764_v17, %v1982_v21  ;;  %v2009_v18 = vadd.f32 %v2765_v37, %v1995_v0  ;;  %4695 = vst [vmem:[#allocation10_spill] sm:$0xff] %v4121_v49 }
 0x79e   : > { %3261 = vrsqrt.f32 %v1971_v26  ;;  %v1964_v28 = vmul.f32 0.03125, %v1956_v51 }
 0x79f   : > { %3263 = vrsqrt.f32 %v1970_v12  ;;  %v2010_v11 = vadd.f32 %v2765_v37, %v1996_v14  ;;  %v1997_v52 = vmul.f32 %v2764_v17, %v1983_v20 }
 0x7a0   : > { %v3258_v36 = vpop.eup %3257  ;;  %v1972_v10 = vadd.f32 1e-05, %v1964_v28 }
 0x7a1   : > { %v1984_v5 = vmul.f32 %v3258_v36, %v4039_v53  ;;  %v2017_v57 = vpack.c.bf16 %v2010_v11, %v2009_v18  ;;  %v2011_v38 = vadd.f32 %v2765_v37, %v1997_v52  ;;  %v4152_v36 = vld [vmem:[%s4663_s8] ss:$0 sm:$0xff] }
 0x7a2   : > { %3265 = vrsqrt.f32 %v1972_v10 }
 0x7a3   : > { %v1998_v7 = vmul.f32 %v2764_v17, %v1984_v5  ;;  %3000 = vmatprep.mubr.msk.bf16.mxu1 %vm4683_vm0, %v2017_v57 }
 0x7a4   : > { %v3260_v15 = vpop.eup %3259 }
 0x7a5   : > { %v2012_v48 = vadd.f32 %v2765_v37, %v1998_v7  ;;  %v1985_v31 = vmul.f32 %v3260_v15, %v4048_v55 }
 0x7a7   : > { %v2018_v43 = vpack.c.bf16 %v2012_v48, %v2011_v38  ;;  %v1999_v53 = vmul.f32 %v2764_v17, %v1985_v31  ;;  %v4558_v38 = vld [vmem:[%s4665_s10] ss:$0 sm:$0xff] }
 0x7a8   : > { %v3262_v56 = vpop.eup %3261 }
 0x7a9   : > { %v3264_v40 = vpop.eup %3263  ;;  %v1987_v44 = vmul.f32 %v3262_v56, %v4045_v3  ;;  %3001 = vmatmul.mubr.msk.bf16.vlgmr.msra.gmra.mrb[32].mxu1 %vm4683_vm0, %v2018_v43  ;;  %v2013_v16 = vadd.f32 %v2765_v37, %v1999_v53  ;;  %v3099_v3 = vld [vmem:[%s4666_s11] sm:$0xff]   ;;  %v4164_v43 = vrot.slane %v3309_v35, 1 }
 0x7aa   : > { %v1986_v32 = vmul.f32 %v3264_v40, %v4054_v25  ;;  %3008 = vmatprep.subr.bf16.mxu0 %v3099_v3  ;;  %v3100_v25 = vld [vmem:[%s4666_s11 + $0x8] sm:$0xff]  }
 0x7ab   : > { %v2001_v30 = vmul.f32 %v2764_v17, %v1987_v44  ;;  %3009 = vmatpush3.bf16.msra.mxu0 %v3099_v3 }
 0x7ac   : > { %v3266_v8 = vpop.eup %3265  ;;  %v2000_v61 = vmul.f32 %v2764_v17, %v1986_v32  ;;  %3010 = vmatprep.subr.bf16.mxu0 %v3100_v25 }
 0x7ad   : > { %v1988_v60 = vmul.f32 %v3266_v8, %v4062_v47  ;;  %v2015_v55 = vadd.f32 %v2765_v37, %v2001_v30  ;;  %v3101_v47 = vld [vmem:[%s4666_s11 + $0x10] sm:$0xff]  }
 0x7ae   : > { %v2014_v24 = vadd.f32 %v2765_v37, %v2000_v61 }
 0x7af   : > { %v2002_v34 = vmul.f32 %v2764_v17, %v1988_v60  ;;  %3011 = vmatpush3.bf16.msra.mxu0 %v3100_v25  ;;  %v4117_v17 = vshrl.u32 %v2121_v1, 7 }
 0x7b0   : > { %v2019_v58 = vpack.c.bf16 %v2014_v24, %v2013_v16  ;;  %3012 = vmatprep.subr.bf16.mxu0 %v3101_v47 }
 0x7b1   : > { %v2016_v39 = vadd.f32 %v2765_v37, %v2002_v34  ;;  %v2130_v27 = vand.u32 7, %v4117_v17  ;;  %v2199_v63 = vsub.s32 0, %v4117_v17  ;;  %v2211_v9 = vsub.s32 1, %v4117_v17 }
 0x7b2   : > { %3004 = vmatprep.mubr.msk.bf16.mxu1 %vm4683_vm0, %v2019_v58  ;;  %v2317_v21 = vsub.s32 4, %v4117_v17  ;;  %v2123_v0 = vadd.s32 8, %v4117_v17  ;;  %v2125_v37 = vadd.s32 24, %v4117_v17  ;;  %v2397_v26 = vsub.s32 7, %v4117_v17 }
 0x7b3   : > { %v2020_v59 = vpack.c.bf16 %v2016_v39, %v2015_v55  ;;  %3013 = vmatpush3.bf16.msra.mxu0 %v3101_v47  ;;  %vm4124_vm3 = vcmp.ge.s32.totalorder %v2130_v27, 1  ;;  %v4133_v6 = vrot.slane %v2154_v54, %v2199_v63  ;;  %v4141_v20 = vadd.s32 32, %v4117_v17 }
 0x7b4   : > { %3014 = vmatprep.subr.bf16.mxu0 %v3102_v45  ;;  %v2189_v12 = vsel %vm4124_vm3, %v4121_v49, 0.0  ;;  %v4143_v51 = vrot.slane %v2154_v54, %v2211_v9  ;;  %v2124_v14 = vadd.s32 16, %v4117_v17  ;;  %v4146_v28 = vrot.slane %v2154_v54, %v2317_v21 }
 0x7b5   : > { %3005 = vmatmul.mubr.msk.bf16.gmra.mrb[36].mxu1 %vm4683_vm0, %v2020_v59  ;;  %v2131_v18 = vand.u32 7, %v2123_v0  ;;  %v2266_v11 = vsub.s32 2, %v4117_v17  ;;  %v2201_v10 = vmul.f32 %v4133_v6, %v2189_v12  ;;  %v2297_v5 = vsub.s32 3, %v4117_v17 }
 0x7b6   : > { %v2213_v52 = vmul.f32 0.0, %v4143_v51  ;;  %v2133_v57 = vand.u32 7, %v2125_v37  ;;  %v4157_v15 = vrot.slane %v2154_v54, %v2397_v26  ;;  %vm4159_vm4 = vcmp.le.s32.totalorder %v2130_v27, 6 }
 0x7b7   : > { %3015 = vmatpush3.bf16.msra.mxu0 %v3102_v45  ;;  %v4671_v48 = vand.u32 7, %v4141_v20  ;;  %v2132_v56 = vand.u32 7, %v2124_v14  ;;  %v2347_v40 = vsub.s32 5, %v4117_v17  ;;  %v2377_v44 = vsub.s32 6, %v4117_v17 }
 0x7b8   : > { %3016 = vmatprep.subr.bf16.mxu0 %v3103_v41  ;;  %vm4171_vm6 = vcmp.ge.s32.totalorder %v2131_v18, 1  ;;  %v4175_v8 = vrot.slane %v2154_v54, %v2266_v11  ;;  %v2221_v30 = vadd.f32 %v2213_v52, %v2201_v10  ;;  %v4180_v16 = vrot.slane %v2154_v54, %v2297_v5 }
 0x7b9   : > { %vm4182_vm8 = vcmp.ge.s32.totalorder %v2133_v57, 1  ;;  %vm4190_vm9 = vcmp.ge.s32.totalorder %v4671_v48, 1  ;;  %v4704_v39 = vmov 0  ;;  %v4195_v59 = vadd.s32 40, %v4117_v17 }
 0x7ba   : > { %v4705_v39 = vsel %vm4190_vm9, 4294967295, %v4704_v39  ;;  %vm4200_vm10 = vcmp.ge.s32.totalorder %v2132_v56, 1  ;;  %vm4204_vm11 = vcmp.le.s32.totalorder %v2133_v57, 6  ;;  %v4208_v45 = vrot.slane %v2154_v54, %v2347_v40 }
 0x7bb   : > { %3017 = vmatpush3.bf16.msra.mxu0 %v3103_v41  ;;  %v4210_v41 = vrot.slane %v2154_v54, %v2377_v44  ;;  %vm4216_vm12 = vcmp.le.s32.totalorder %v2132_v56, 6  ;;  %vm4220_vm13 = vcmp.le.s32.totalorder %v2131_v18, 6  ;;  %v4225_v27 = vadd.s32 48, %v4117_v17 }
 0x7bc   : > { %3018 = vmatprep.subr.bf16.mxu0 %v3104_v23  ;;  %v4673_v37 = vand.u32 7, %v4195_v59  ;;  %v4237_v26 = vadd.s32 56, %v4117_v17 }
 0x7be   : > { %vm4313_vm14 = vcmp.ge.s32.totalorder %v4673_v37, 1 }
 0x7bf   : > { %3019 = vmatpush3.bf16.msra.mxu0 %v3104_v23 }
 0x7c0   : > { %3020 = vmatprep.subr.bf16.mxu0 %v3105_v22 }
 0x7c3   : > { %3021 = vmatpush3.bf16.msra.mxu0 %v3105_v22 }
 0x7c4   : > { %3022 = vmatprep.subr.bf16.mxu0 %v3106_v19 }
 0x7c7   : > { %3023 = vmatpush3.bf16.msra.mxu0 %v3106_v19 }
 0x87c   : > { %v3002_v7 = vpop.f32.mrb[32].mxu1 }
 0x87d   : > { %v2090_v31 = vpop.f32.mrb[33].mxu1  ;;  %v4178_v60 = vadd.f32 %v3002_v7, %v4152_v36 }
 0x87e   : > { %v4169_v32 = vadd.f32 %v4152_v36, %v2090_v31  ;;  %v3003_v61 = vpop.f32.mrb[34].mxu1 }
 0x87f   : > { %v2093_v34 = vpop.f32.mrb[35].mxu1  ;;  %v4198_v3 = vadd.f32 %v3003_v61, %v4152_v36  ;;  %v2171_v63 = vrot.slane %v4178_v60, 7  ;;  %v2236_v21 = vrot.slane %v4178_v60, 1  ;;  %v2216_v40 = vmul.f32 %v4143_v51, %v4178_v60 }
 0x880   : > { %v2167_v58 = vrot.slane %v4169_v32, 7  ;;  %v2232_v55 = vrot.slane %v4169_v32, 1  ;;  %v4248_v11 = vadd.f32 %v4152_v36, %v2093_v34  ;;  %v2214_v44 = vmul.f32 %v4143_v51, %v4169_v32 }
 0x881   : > { %v4670_v54 = vrot.slane %v4198_v3, 7  ;;  %v4669_v18 = vrot.slane %v4198_v3, 1  ;;  %v2217_v7 = vmul.f32 %v4143_v51, %v4198_v3  ;;  %v2137_v34 = vand.u32 7, %v4237_v26 }
 0x882   : > { %v2168_v23 = vsel %vm4684_vm5, %v4121_v49, %v2167_v58  ;;  %v2233_v22 = vsel %vm2230_vm7, %v4164_v43, %v2232_v55  ;;  %v2399_v19 = vmul.f32 %v4157_v15, %v4248_v11 }
 0x883   : > { %v2190_v35 = vsel %vm4171_vm6, %v2168_v23, 0.0  ;;  %v2256_v9 = vsel %vm4159_vm4, %v2233_v22, 0.0  ;;  %v2287_v12 = vsel %vm4124_vm3, %v2168_v23, 0.0  ;;  %v4244_v14 = vsel %vm4684_vm5, %v2171_v63, %v4670_v54 }
 0x884   : > { %v2268_v0 = vmul.f32 %v4175_v8, %v2256_v9  ;;  %v2202_v10 = vmul.f32 %v4133_v6, %v2190_v35  ;;  %v2193_v17 = vsel %vm4190_vm9, %v4244_v14, 0.0  ;;  %v4261_v31 = vsel %vm2230_vm7, %v2236_v21, %v4669_v18 }
 0x885   : > { %v2205_v57 = vmul.f32 %v4133_v6, %v2193_v17  ;;  %4714 = vst [vmem:[#allocation11_spill] sm:$0xff] %v4261_v31  ;;  %v2290_v56 = vsel %vm4182_vm8, %v4244_v14, 0.0  ;;  %v2299_v61 = vmul.f32 %v4180_v16, %v2287_v12  ;;  %v2321_v23 = vmul.f32 %v4146_v28, %v4178_v60 }
 0x886   : > { %v2276_v52 = vadd.f32 %v2268_v0, %v2221_v30  ;;  %v2319_v22 = vmul.f32 %v4146_v28, %v4169_v32  ;;  %v2169_v9 = vrot.slane %v4248_v11, 7  ;;  %v2222_v17 = vadd.f32 %v2214_v44, %v2202_v10 }
 0x887   : > { %v4276_v35 = vadd.f32 %v2217_v7, %v2205_v57  ;;  %v2302_v18 = vmul.f32 %v4180_v16, %v2290_v56  ;;  %v2234_v12 = vrot.slane %v4248_v11, 1  ;;  %v2259_v26 = vsel %vm4204_vm11, %v4261_v31, 0.0 }
 0x888   : > { %v3006_v30 = vpop.f32.mrb[36].mxu1  ;;  %v2307_v5 = vadd.f32 %v2299_v61, %v2276_v52  ;;  %v4285_v48 = vsel %vm4684_vm5, %v2167_v58, %v2169_v9  ;;  %v4288_v32 = vsel %vm4684_vm5, %v2169_v9, %v2171_v63  ;;  %v2215_v57 = vmul.f32 %v4143_v51, %v4248_v11 }
 0x889   : > { %v2106_v0 = vpop.f32.mrb[37].mxu1  ;;  %v2191_v52 = vsel %vm4200_vm10, %v4285_v48, 0.0  ;;  %v2192_v7 = vsel %vm4182_vm8, %v4288_v32, 0.0  ;;  %v2235_v56 = vsel %vm2230_vm7, %v2232_v55, %v2234_v12  ;;  %v4302_v58 = vsel %vm2230_vm7, %v2234_v12, %v2236_v21 }
 0x88a   : > { %v3007_v54 = vpop.f32.mrb[38].mxu1  ;;  %v2203_v63 = vmul.f32 %v4133_v6, %v2191_v52  ;;  %v2204_v44 = vmul.f32 %v4133_v6, %v2192_v7  ;;  %v2257_v61 = vsel %vm4220_vm13, %v2235_v56, 0.0  ;;  %v2258_v9 = vsel %vm4216_vm12, %v4302_v58, 0.0 }
 0x88b   : > { %v4292_v10 = vpop.f32.mrb[39].mxu1  ;;  %v4717_v55 = vand.u32 7, %v4141_v20  ;;  %v2339_v12 = vsel %vm4216_vm12, %v4261_v31, 0.0  ;;  %v2269_v52 = vmul.f32 %v4175_v8, %v2257_v61  ;;  %v2288_v7 = vsel %vm4171_vm6, %v4285_v48, 0.0 }
 0x88c   : > { %v2289_v37 = vsel %vm4200_vm10, %v4288_v32, 0.0  ;;  %v2271_v20 = vmul.f32 %v4175_v8, %v2259_v26  ;;  %v2224_v42 = vadd.f32 %v2216_v40, %v2204_v44  ;;  %v2270_v46 = vmul.f32 %v4175_v8, %v2258_v9 }
 0x88d   : > { %vm4319_vm15 = vcmp.le.s32.totalorder %v4717_v55, 6  ;;  %v2223_v55 = vadd.f32 %v2215_v57, %v2203_v63  ;;  %v2327_v4 = vadd.f32 %v2319_v22, %v2307_v5  ;;  %v2277_v33 = vadd.f32 %v2269_v52, %v2222_v17 }
 0x88e   : > { %v2300_v2 = vmul.f32 %v4180_v16, %v2288_v7  ;;  %v2337_v61 = vsel %vm4159_vm4, %v2235_v56, 0.0  ;;  %v2279_v62 = vadd.f32 %v2271_v20, %v2224_v42  ;;  %v2301_v49 = vmul.f32 %v4180_v16, %v2289_v37 }
 0x88f   : > { %v2278_v50 = vadd.f32 %v2270_v46, %v2223_v55  ;;  %v2338_v31 = vsel %vm4220_vm13, %v4302_v58, 0.0  ;;  %v2320_v40 = vmul.f32 %v4146_v28, %v4248_v11  ;;  %v2349_v5 = vmul.f32 %v4208_v45, %v2337_v61 }
 0x890   : > { %v2308_v26 = vadd.f32 %v2300_v2, %v2277_v33  ;;  %v4346_v22 = vadd.f32 %v3006_v30, %v4152_v36  ;;  %v2322_v17 = vmul.f32 %v4146_v28, %v4198_v3  ;;  %v4351_v42 = vadd.f32 %v4152_v36, %v2106_v0 }
 0x891   : > { %v2309_v46 = vadd.f32 %v2301_v49, %v2278_v50  ;;  %v2310_v37 = vadd.f32 %v2302_v18, %v2279_v62  ;;  %vm4353_vm1 = vcmp.ge.s32.totalorder %v2137_v34, 1  ;;  %vm4357_vm2 = vcmp.le.s32.totalorder %v2137_v34, 6 }
 0x892   : > { %v2328_v2 = vadd.f32 %v2320_v40, %v2308_v26  ;;  %v2350_v30 = vmul.f32 %v4208_v45, %v2338_v31  ;;  %v4363_v56 = vadd.f32 %v3007_v54, %v4152_v36  ;;  %v4365_v63 = vadd.f32 %v2349_v5, %v2327_v4 }
 0x893   : > { %v2351_v50 = vmul.f32 %v4208_v45, %v2339_v12  ;;  %v2329_v49 = vadd.f32 %v2321_v23, %v2309_v46  ;;  %v2175_v62 = vrot.slane %v4351_v42, 7  ;;  %v2240_v18 = vrot.slane %v4351_v42, 1 }
 0x894   : > { %v4370_v0 = vadd.f32 %v2350_v30, %v2328_v2  ;;  %v2179_v34 = vrot.slane %v4346_v22, 7  ;;  %v2244_v44 = vrot.slane %v4346_v22, 1  ;;  %v2330_v9 = vadd.f32 %v2322_v17, %v2310_v37 }
 0x895   : > { %v4374_v31 = vadd.f32 %v2351_v50, %v2329_v49  ;;  %v4724_v54 = vrot.slane %v4198_v3, 7  ;;  %v4725_v23 = vrot.slane %v4198_v3, 1  ;;  %v2246_v52 = vrot.slane %v4363_v56, 1 }
 0x896   : > { %v2218_v40 = vmul.f32 %v4143_v51, %v4351_v42  ;;  %v4726_v46 = vand.u32 7, %v4225_v27  ;;  %v4741_v21 = vrot.slane %v4363_v56, 7  ;;  %v2406_v49 = vmul.f32 0.0, %v4157_v15 }
 0x897   : > { %v2176_v4 = vsel %vm4684_vm5, %v4724_v54, %v2175_v62  ;;  %v2241_v12 = vsel %vm2230_vm7, %v4725_v23, %v2240_v18  ;;  %v4414_v54 = vsel %vm2230_vm7, %v2244_v44, %v2246_v52  ;;  %v4686_v23 = vrot.slane %v4363_v56, 7 }
 0x898   : > { %v2194_v7 = vsel %vm4313_vm14, %v2176_v4, 0.0  ;;  %v2260_v20 = vsel %vm4319_vm15, %v2241_v12, 0.0  ;;  %v2291_v55 = vsel %vm4190_vm9, %v2176_v4, 0.0  ;;  %v2340_v61 = vsel %vm4204_vm11, %v2241_v12, 0.0 }
 0x899   : > { %v2206_v26 = vmul.f32 %v4133_v6, %v2194_v7  ;;  %v2272_v5 = vmul.f32 %v4175_v8, %v2260_v20  ;;  %v2352_v17 = vmul.f32 %v4208_v45, %v2340_v61  ;;  %vm4400_vm0 = vcmp.ge.s32.totalorder %v4726_v46, 1 }
 0x89a   : > { %v2303_v2 = vmul.f32 %v4180_v16, %v2291_v55  ;;  %v2370_v30 = vsel %vm4182_vm8, %v2176_v4, 0.0  ;;  %v4729_v50 = vmov %v4726_v46  ;;  %v4732_v7 = vand.u32 7, %v4195_v59 }
 0x89b   : > { %vm4409_vm5 = vcmp.le.s32.totalorder %v4729_v50, 6  ;;  %v2226_v55 = vadd.f32 %v2218_v40, %v2206_v26  ;;  %v2280_v24 = vadd.f32 %v2272_v5, %v4276_v35  ;;  %v2360_v4 = vadd.f32 %v2352_v17, %v2330_v9 }
 0x89c   : > { %vm4419_vm9 = vcmp.le.s32.totalorder %v4732_v7, 6  ;;  %v2382_v27 = vmul.f32 %v4210_v41, %v2370_v30  ;;  %v2369_v61 = vsel %vm4200_vm10, %v4244_v14, 0.0  ;;  %v2323_v46 = vmul.f32 %v4146_v28, %v4351_v42 }
 0x89d   : > { %vm4735_vm8 = vcmask 1040384   ;;  %v4437_v26 = vadd.f32 %v4152_v36, %v4292_v10  ;;  %v2311_v35 = vadd.f32 %v2303_v2, %v2280_v24  ;;  %v2402_v40 = vmul.f32 %v4157_v15, %v4351_v42 }
 0x89e   : > { %v4433_v59 = vsel %vm4735_vm8, %v2179_v34, %v4686_v23  ;;  %v2390_v9 = vadd.f32 %v2382_v27, %v2360_v4  ;;  %v2419_v25 = vsel %vm4216_vm12, %v2241_v12, 0.0  ;;  %v4445_v14 = vmul.f32 %v4157_v15, %v4178_v60  ;;  %v4463_v60 = vld [vmem:[%s4664_s9 + $0x8] ss:$0 sm:$0xff]  ;;  %vm4736_vm10 = vmmov %vm4735_vm8 }
 0x89f   : > { %v4449_v5 = vmul.f32 %v4157_v15, %v4198_v3  ;;  %v2263_v36 = vsel %vm4357_vm2, %v4414_v54, 0.0  ;;  %v2294_v10 = vsel %vm4353_vm1, %v4433_v59, 0.0  ;;  %v2381_v17 = vmul.f32 %v4210_v41, %v2369_v61  ;;  %vm4737_vm12 = vmmov %vm4735_vm8 }
 0x8a0   : > { %v4465_v3 = vadd.f32 %v2323_v46, %v2311_v35  ;;  %v2410_v12 = vadd.f32 %v2402_v40, %v2390_v9  ;;  %v2220_v2 = vmul.f32 %v4143_v51, %v4346_v22  ;;  %v4471_v30 = vmul.f32 %v4146_v28, %v4346_v22 }
 0x8a1   : > { %v4475_v50 = vmul.f32 %v4157_v15, %v4346_v22  ;;  %v4478_v11 = vmul.f32 %v4463_v60, %v2419_v25  ;;  %v4481_v7 = vmul.f32 %v4175_v8, %v2263_v36  ;;  %v4484_v24 = vmul.f32 %v4180_v16, %v2294_v10 }
 0x8a2   : > { %v4488_v4 = vmul.f32 %v4146_v28, %v4363_v56  ;;  %v2177_v27 = vrot.slane %v4437_v26, 7  ;;  %v4493_v61 = vsel %vm2230_vm7, %v2246_v52, %v4164_v43  ;;  %v2219_v22 = vmul.f32 %v4143_v51, %v4437_v26 }
 0x8a3   : > { %v2242_v46 = vrot.slane %v4437_v26, 1  ;;  %v2324_v35 = vmul.f32 %v4146_v28, %v4437_v26  ;;  %v2367_v25 = vsel %vm4124_vm3, %v4285_v48, 0.0  ;;  %v2368_v52 = vsel %vm4171_vm6, %v4288_v32, 0.0 }
 0x8a4   : > { %v2178_v9 = vsel %vm4736_vm10, %v2175_v62, %v2177_v27  ;;  %v2180_v40 = vsel %vm4737_vm12, %v2177_v27, %v2179_v34  ;;  %vm4739_vm3 = vnez %v4705_v39  ;;  %v2403_v39 = vmul.f32 %v4157_v15, %v4437_v26 }
 0x8a5   : > { %v2195_v51 = vsel %vm4400_vm0, %v2178_v9, 0.0  ;;  %v2196_v36 = vsel %vm4353_vm1, %v2180_v40, 0.0  ;;  %v2243_v28 = vsel %vm2230_vm7, %v2240_v18, %v2242_v46  ;;  %v4516_v62 = vsel %vm2230_vm7, %v2242_v46, %v2244_v44 }
 0x8a6   : > { %v2207_v13 = vmul.f32 %v4133_v6, %v2195_v51  ;;  %v2208_v48 = vmul.f32 %v4133_v6, %v2196_v36  ;;  %v2261_v53 = vsel %vm4419_vm9, %v2243_v28, 0.0  ;;  %v2262_v32 = vsel %vm4409_vm5, %v4516_v62, 0.0 }
 0x8a7   : > { %v2273_v34 = vmul.f32 %v4175_v8, %v2261_v53  ;;  %v2274_v42 = vmul.f32 %v4175_v8, %v2262_v32  ;;  %v2292_v18 = vsel %vm4313_vm14, %v2178_v9, 0.0  ;;  %v2293_v44 = vsel %vm4400_vm0, %v2180_v40, 0.0 }
 0x8a8   : > { %v2227_v10 = vadd.f32 %v2219_v22, %v2207_v13  ;;  %v2228_v27 = vadd.f32 %v2220_v2, %v2208_v48  ;;  %v2304_v6 = vmul.f32 %v4180_v16, %v2292_v18  ;;  %v2305_v46 = vmul.f32 %v4180_v16, %v2293_v44  ;;  %v4738_v48 = vld [vmem:[#allocation11_spill] sm:$0xff] }
 0x8a9   : > { %v2281_v51 = vadd.f32 %v2273_v34, %v2226_v55  ;;  %v2341_v36 = vsel %vm4319_vm15, %v2243_v28, 0.0  ;;  %v2342_v8 = vsel %vm4419_vm9, %v4516_v62, 0.0  ;;  %v2420_v53 = vsel %vm4204_vm11, %v2243_v28, 0.0 }
 0x8aa   : > { %v2282_v32 = vadd.f32 %v2274_v42, %v2227_v10  ;;  %v2354_v23 = vmul.f32 %v4208_v45, %v2342_v8  ;;  %v2432_v2 = vmul.f32 %v4463_v60, %v2420_v53  ;;  %v2379_v22 = vmul.f32 %v4210_v41, %v2367_v25 }
 0x8ab   : > { %v2312_v13 = vadd.f32 %v2304_v6, %v2281_v51  ;;  %v2380_v16 = vmul.f32 %v4210_v41, %v2368_v52  ;;  %v2417_v55 = vsel %vm4159_vm4, %v4302_v58, 0.0  ;;  %v2418_v34 = vsel %vm4220_vm13, %v4738_v48, 0.0  ;;  %vm4742_vm4 = vmmov %vm4735_vm8 }
 0x8ac   : > { %v2313_v47 = vadd.f32 %v2305_v46, %v2282_v32  ;;  %v2387_v28 = vadd.f32 %v2379_v22, %v4365_v63  ;;  %v2429_v42 = vmul.f32 %v4463_v60, %v2417_v55  ;;  %v2430_v18 = vmul.f32 %v4463_v60, %v2418_v34  ;;  %v4740_v22 = vld [vmem:[#allocation10_spill] sm:$0xff] }
 0x8ad   : > { %v2332_v44 = vadd.f32 %v2324_v35, %v2312_v13  ;;  %v2388_v25 = vadd.f32 %v2380_v16, %v4370_v0  ;;  %v2389_v52 = vadd.f32 %v2381_v17, %v4374_v31  ;;  %v2440_v10 = vadd.f32 %v2432_v2, %v2410_v12 }
 0x8ae   : > { %v2407_v6 = vadd.f32 %v2399_v19, %v2387_v28  ;;  %v2353_v1 = vmul.f32 %v4208_v45, %v2341_v36  ;;  %v2371_v58 = vsel %vm4739_vm3, %v2178_v9, 0.0  ;;  %v2372_v63 = vsel %vm4313_vm14, %v2180_v40, 0.0 }
 0x8af   : > { %v2362_v35 = vadd.f32 %v2354_v23, %v2332_v44  ;;  %v2408_v0 = vadd.f32 %v4445_v14, %v2388_v25  ;;  %v2409_v31 = vadd.f32 %v4449_v5, %v2389_v52  ;;  %v4568_v17 = vadd.f32 %v4558_v38, %v2440_v10 }
 0x8b0   : > { %v2437_v19 = vadd.f32 %v2429_v42, %v2407_v6  ;;  %v2361_v12 = vadd.f32 %v2353_v1, %v4465_v3  ;;  %v2383_v46 = vmul.f32 %v4210_v41, %v2371_v58  ;;  %v2384_v51 = vmul.f32 %v4210_v41, %v2372_v63 }
 0x8b1   : > { %v2438_v29 = vadd.f32 %v2430_v18, %v2408_v0  ;;  %v2439_v23 = vadd.f32 %v4478_v11, %v2409_v31  ;;  %v2471_v14 = vmul.f32 0.70710677, %v4568_v17  ;;  %v2421_v3 = vsel %vm4319_vm15, %v4516_v62, 0.0 }
 0x8b2   : > { %v2452_v5 = vadd.f32 %v4558_v38, %v2437_v19  ;;  %v2391_v9 = vadd.f32 %v2383_v46, %v2361_v12  ;;  %v2392_v40 = vadd.f32 %v2384_v51, %v2362_v35  ;;  %v2422_v26 = vsel %vm4419_vm9, %v4414_v54, 0.0 }
 0x8b3   : > { %v2453_v36 = vadd.f32 %v4558_v38, %v2438_v29  ;;  %v2454_v8 = vadd.f32 %v4558_v38, %v2439_v23  ;;  %3267 = verf.f32 %v2471_v14  ;;  %v2343_v11 = vsel %vm4409_vm5, %v4414_v54, 0.0 }
 0x8b4   : > { %v2468_v53 = vmul.f32 0.70710677, %v2452_v5  ;;  %v2411_v32 = vadd.f32 %v2403_v39, %v2391_v9  ;;  %v2412_v2 = vadd.f32 %v4475_v50, %v2392_v40  ;;  %v2365_v62 = vsel %vm4742_vm4, %v4741_v21, %v4740_v22 }
 0x8b5   : > { %v2373_v13 = vsel %vm4400_vm0, %v4433_v59, 0.0  ;;  %v2469_v16 = vmul.f32 0.70710677, %v2453_v36  ;;  %v2470_v20 = vmul.f32 0.70710677, %v2454_v8  ;;  %v2433_v55 = vmul.f32 %v4463_v60, %v2421_v3 }
 0x8b6   : > { %3269 = verf.f32 %v2468_v53  ;;  %v2434_v54 = vmul.f32 %v4463_v60, %v2422_v26  ;;  %v2283_v48 = vadd.f32 %v4481_v7, %v2228_v27  ;;  %v2344_v50 = vsel %vm4357_vm2, %v4493_v61, 0.0 }
 0x8b7   : > { %v2355_v34 = vmul.f32 %v4208_v45, %v2343_v11  ;;  %3271 = verf.f32 %v2469_v16  ;;  %v2333_v28 = vadd.f32 %v4471_v30, %v2313_v47  ;;  %v2441_v37 = vadd.f32 %v2433_v55, %v2411_v32 }
 0x8b8   : > { %3273 = verf.f32 %v2470_v20  ;;  %v2442_v59 = vadd.f32 %v2434_v54, %v2412_v2  ;;  %v2314_v42 = vadd.f32 %v4484_v24, %v2283_v48  ;;  %v2374_v18 = vsel %vm4353_vm1, %v2365_v62, 0.0 }
 0x8b9   : > { %v2385_v44 = vmul.f32 %v4210_v41, %v2373_v13  ;;  %v2363_v7 = vadd.f32 %v2355_v34, %v2333_v28  ;;  %v2423_v27 = vsel %vm4409_vm5, %v4493_v61, 0.0  ;;  %v2456_v25 = vadd.f32 %v4558_v38, %v2441_v37 }
 0x8ba   : > { %v2457_v52 = vadd.f32 %v4558_v38, %v2442_v59  ;;  %v2334_v30 = vadd.f32 %v4488_v4, %v2314_v42  ;;  %v2356_v47 = vmul.f32 %v4208_v45, %v2344_v50  ;;  %v2405_v24 = vmul.f32 %v4157_v15, %v4363_v56  ;;  %v2775_v42 = vld [vmem:[%s4667_s12] ss:$0 sm:$0xff] }
 0x8bb   : > { %v2393_v57 = vadd.f32 %v2385_v44, %v2363_v7  ;;  %v2424_v10 = vsel %vm4357_vm2, %v4164_v43, 0.0  ;;  %v2472_v6 = vmul.f32 0.70710677, %v2456_v25  ;;  %v2386_v58 = vmul.f32 %v4210_v41, %v2374_v18 }
 0x8bc   : > { %v2473_v1 = vmul.f32 0.70710677, %v2457_v52  ;;  %v2364_v63 = vadd.f32 %v2356_v47, %v2334_v30  ;;  %v2435_v4 = vmul.f32 %v4463_v60, %v2423_v27  ;;  %v2436_v45 = vmul.f32 %v4463_v60, %v2424_v10 }
 0x8bd   : > { %v3268_v61 = vpop.eup %3267  ;;  %v2413_v35 = vadd.f32 %v2405_v24, %v2393_v57  ;;  %3275 = verf.f32 %v2472_v6  ;;  %v2463_v12 = vmul.f32 0.5, %v4568_v17  ;;  %v2460_v51 = vmul.f32 0.5, %v2452_v5  ;;  %v4744_v57 = vld [vmem:[#allocation2_spill] sm:$0xff] }
 0x8be   : > { %v2487_v56 = vadd.f32 1.0, %v3268_v61  ;;  %3277 = verf.f32 %v2473_v1  ;;  %v2394_v0 = vadd.f32 %v2386_v58, %v2364_v63  ;;  %v2461_v39 = vmul.f32 0.5, %v2453_v36  ;;  %v4746_v1 = vld [vmem:[#allocation5_spill] sm:$0xff]  ;;  %v4748_v61 = vld [vmem:[#allocation4_spill] sm:$0xff] }
 0x8bf   : > { %v2443_v31 = vadd.f32 %v2435_v4, %v2413_v35  ;;  %v2462_v23 = vmul.f32 0.5, %v2454_v8  ;;  %v2464_v36 = vmul.f32 0.5, %v2456_v25  ;;  %v2465_v8 = vmul.f32 0.5, %v2457_v52  ;;  %v4743_v52 = vld [vmem:[#allocation3_spill] sm:$0xff] }
 0x8c0   : > { %v3270_v33 = vpop.eup %3269  ;;  %v2414_v15 = vadd.f32 %v2406_v49, %v2394_v0  ;;  %v2495_v9 = vmul.f32 %v2487_v56, %v2463_v12  ;;  %vm4745_vm0 = vcmask 261120   ;;  %v4751_v0 = vld [vmem:[#allocation6_spill] sm:$0xff] }
 0x8c1   : > { %v3272_v43 = vpop.eup %3271  ;;  %v2484_v19 = vadd.f32 1.0, %v3270_v33  ;;  %v2458_v46 = vadd.f32 %v4558_v38, %v2443_v31  ;;  %vm4747_vm5 = vmmov %vm4745_vm0 }
 0x8c2   : > { %v3274_v41 = vpop.eup %3273  ;;  %v2485_v29 = vadd.f32 1.0, %v3272_v43  ;;  %v2444_v60 = vadd.f32 %v2436_v45, %v2414_v15  ;;  %vm4749_vm6 = vmmov %vm4745_vm0 }
 0x8c3   : > { %v2486_v14 = vadd.f32 1.0, %v3274_v41  ;;  %v2492_v40 = vmul.f32 %v2484_v19, %v2460_v51  ;;  %v2474_v26 = vmul.f32 0.70710677, %v2458_v46  ;;  %v2466_v54 = vmul.f32 0.5, %v2458_v46  ;;  %vm4750_vm7 = vmmov %vm4745_vm0  ;;  %v4752_v19 = vld [vmem:[#allocation7_spill] sm:$0xff]  ;;  %v4754_v46 = vld [vmem:[#allocation9_spill] sm:$0xff] }
 0x8c4   : > { %v2493_v3 = vmul.f32 %v2485_v29, %v2461_v39  ;;  %v2459_v53 = vadd.f32 %v4558_v38, %v2444_v60  ;;  %vm4753_vm9 = vmmov %vm4745_vm0  ;;  %v4756_v51 = vld [vmem:[#allocation8_spill] sm:$0xff] }
 0x8c5   : > { %v2494_v11 = vmul.f32 %v2486_v14, %v2462_v23  ;;  %3279 = verf.f32 %v2474_v26  ;;  %vm4755_vm11 = vmmov %vm4745_vm0 }
 0x8c6   : > { %v2500_v32 = vpack.c.bf16 %v2493_v3, %v2492_v40  ;;  %v2475_v2 = vmul.f32 0.70710677, %v2459_v53  ;;  %v2467_v50 = vmul.f32 0.5, %v2459_v53  ;;  %vm4757_vm13 = vmmov %vm4745_vm0 }
 0x8c7   : > { %v2501_v17 = vpack.c.bf16 %v2495_v9, %v2494_v11  ;;  %v3276_v22 = vpop.eup %3275  ;;  %vm4758_vm14 = vmmov %vm4745_vm0 }
 0x8c8   : > { %3024 = vmatprep.mubr.bf16.mxu0 %v2500_v32  ;;  %v3278_v21 = vpop.eup %3277  ;;  %v2488_v5 = vadd.f32 1.0, %v3276_v22  ;;  %3281 = verf.f32 %v2475_v2 }
 0x8c9   : > { %3025 = vmatmul.mubr.bf16.vlgmr.msra.gmra.mrb[24].mxu0 %v2501_v17  ;;  %v2489_v62 = vadd.f32 1.0, %v3278_v21 }
 0x8ca   : > { %v2496_v13 = vmul.f32 %v2488_v5, %v2464_v36 }
 0x8cb   : > { %v2497_v16 = vmul.f32 %v2489_v62, %v2465_v8 }
 0x8cd   : > { %v2502_v20 = vpack.c.bf16 %v2497_v16, %v2496_v13 }
 0x8cf   : > { %v3280_v55 = vpop.eup %3279  ;;  %3028 = vmatprep.mubr.bf16.mxu0 %v2502_v20 }
 0x8d0   : > { %v2490_v38 = vadd.f32 1.0, %v3280_v55 }
 0x8d2   : > { %v3282_v48 = vpop.eup %3281  ;;  %v2498_v28 = vmul.f32 %v2490_v38, %v2466_v54 }
 0x8d3   : > { %v2491_v34 = vadd.f32 1.0, %v3282_v48 }
 0x8d5   : > { %v2499_v37 = vmul.f32 %v2491_v34, %v2467_v50 }
 0x8d7   : > { %v2503_v59 = vpack.c.bf16 %v2499_v37, %v2498_v28 }
 0x8d9   : > { %3029 = vmatmul.mubr.bf16.gmra.mrb[28].mxu0 %v2503_v59 }
 0x99c   : > { %v3026_v18 = vpop.f32.mrb[24].mxu0 }
 0x99d   : > { %v2618_v44 = vadd.f32 %v3026_v18, %v2775_v42  ;;  %v2609_v7 = vpop.f32.mrb[25].mxu0 }
 0x99e   : > { %v2610_v27 = vadd.f32 %v2775_v42, %v2609_v7  ;;  %v3027_v25 = vpop.f32.mrb[26].mxu0 }
 0x99f   : > { %v2642_v30 = vadd.f32 %v2618_v44, %v4743_v52  ;;  %v2621_v47 = vadd.f32 %v3027_v25, %v2775_v42  ;;  %v2612_v24 = vpop.f32.mrb[27].mxu0 }
 0x9a0   : > { %v2640_v10 = vadd.f32 %v2610_v27, %v4744_v57  ;;  %v2613_v6 = vadd.f32 %v2775_v42, %v2612_v24 }
 0x9a1   : > { %2650 = vst.msk [vmem:[%s442_s19 + $0x10] sm:$0xff] %vm4745_vm0, %v2642_v30  ;;  %v2643_v49 = vadd.f32 %v2621_v47, %v4746_v1 }
 0x9a2   : > { %2648 = vst.msk [vmem:[%s442_s19] sm:$0xff] %vm4747_vm5, %v2640_v10  ;;  %v2641_v58 = vadd.f32 %v2613_v6, %v4748_v61 }
 0x9a3   : > { %2651 = vst.msk [vmem:[%s442_s19 + $0x18] sm:$0xff] %vm4749_vm6, %v2643_v49 }
 0x9a4   : > { %2649 = vst.msk [vmem:[%s442_s19 + $0x8] sm:$0xff] %vm4750_vm7, %v2641_v58 }
 0x9ac   : > { %v3030_v63 = vpop.f32.mrb[28].mxu0 }
 0x9ad   : > { %v2634_v35 = vadd.f32 %v3030_v63, %v2775_v42  ;;  %v2625_v4 = vpop.f32.mrb[29].mxu0 }
 0x9ae   : > { %v2626_v45 = vadd.f32 %v2775_v42, %v2625_v4  ;;  %v3031_v56 = vpop.f32.mrb[30].mxu0 }
 0x9af   : > { %v2646_v31 = vadd.f32 %v2634_v35, %v4751_v0  ;;  %v2637_v33 = vadd.f32 %v3031_v56, %v2775_v42  ;;  %v2628_v43 = vpop.f32.mrb[31].mxu0 }
 0x9b0   : > { %v2644_v12 = vadd.f32 %v2626_v45, %v4752_v19  ;;  %v2629_v15 = vadd.f32 %v2775_v42, %v2628_v43 }
 0x9b1   : > { %2654 = vst.msk [vmem:[%s442_s19 + $0x30] sm:$0xff] %vm4753_vm9, %v2646_v31  ;;  %v2647_v41 = vadd.f32 %v2637_v33, %v4754_v46 }
 0x9b2   : > { %2652 = vst.msk [vmem:[%s442_s19 + $0x20] sm:$0xff] %vm4755_vm11, %v2644_v12  ;;  %v2645_v39 = vadd.f32 %v2629_v15, %v4756_v51 }
 0x9b3   : > { %2655 = vst.msk [vmem:[%s442_s19 + $0x38] sm:$0xff] %vm4757_vm13, %v2647_v41 }
 0x9b4   : > { %2653 = vst.msk [vmem:[%s442_s19 + $0x28] sm:$0xff] %vm4758_vm14, %v2645_v39 }
 0x9b5 PF: > { %s23_s25 = sadd.s32 1, %s3297_s25  }
 0x9b6   : > { %p20_p4 = scmp.ge.s32.totalorder %s23_s25, 4  }
 0x9b8   :  { %22 = sbr.rel (!%p20_p4) target bundleno = 1 (0x1), region = 102 }

</bundles_post_ra>
